<compile_context>
chip_gen: v7x
topology: tpu7x:2x2x1
jax: 0.10.0
libtpu: 0.0.40
codegen_flags: <defaults>
</compile_context>

<pallas_src>
import functools
import math

import jax
import jax.numpy as jnp
from jax.experimental import pallas as pl
from jax.experimental.pallas import tpu as pltpu

_LANE = 128


def _round_up(v, m):
    return (v + m - 1) // m * m


# ----------------------------- kernels -----------------------------

def _init_proj_kernel(x_ref, w_ref, b_ref, dinv_ref, g_ref, out_ref, *, alpha):
    """Project-first init: h0 = x @ W ; out0 = alpha*h0 + b ; g0 = dinv*h0."""
    h0 = jnp.dot(x_ref[...].astype(jnp.float32), w_ref[...].astype(jnp.float32),
                 preferred_element_type=jnp.float32)
    out_ref[...] = alpha * h0 + b_ref[...].astype(jnp.float32)
    g_ref[...] = (dinv_ref[...] * h0).astype(g_ref.dtype)


def _init_raw_kernel(x_ref, dinv_ref, g_ref, out_ref, *, alpha):
    """Project-last init: h0 = x ; out0 = alpha*x ; g0 = dinv*x."""
    x = x_ref[...].astype(jnp.float32)
    out_ref[...] = alpha * x
    g_ref[...] = (dinv_ref[...] * x).astype(g_ref.dtype)


def _prop_kernel(adj_ref, g_ref, dinv_ref, out_in_ref,
                 g_out_ref, out_out_ref, acc_ref, *, coef, sl, tile, resident):
    """One propagation hop, tiled over (row tiles, contraction tiles).

    g = dinv * h is carried between hops; using
        D^-1/2 (A + sl*I) D^-1/2 h = dinv * (A @ g + sl * g)
    the self loop and the degree normalization are a few VPU ops per row tile
    (no normalized N x N adjacency, no N x N diagonal mask).  The self-loop
    term is added at the diagonal grid step c == r, where the current
    contraction slice of g IS the row slice.

    NOTE: g_out_ref / out_out_ref are only written inside
    @pl.when(c == last).  This is the standard accumulator pattern: their
    block index only depends on r, so Pallas flushes the block after the last
    c step of each row.  Do not add a parallel split on the contraction axis.
    """
    r = pl.program_id(0)
    c = pl.program_id(1)

    @pl.when(c == 0)
    def _():
        acc_ref[...] = jnp.zeros_like(acc_ref)

    a = adj_ref[...]
    if resident:   # g fully resident in VMEM: slice the contraction block.
        gc = g_ref[pl.ds(pl.multiple_of(c * tile, tile), tile), :]
    else:          # g streamed per contraction tile.
        gc = g_ref[...]
    acc_ref[...] += jnp.dot(a, gc.astype(a.dtype),
                            preferred_element_type=jnp.float32)

    if sl != 0.0:  # static flag; self loop folded algebraically at c == r
        @pl.when(c == r)
        def _():
            acc_ref[...] += sl * gc.astype(jnp.float32)

    @pl.when(c == pl.num_programs(1) - 1)
    def _():
        dinv = dinv_ref[...]                       # (T, 1)
        h = dinv * acc_ref[...]                    # this row block of A_n^k h0
        g_out_ref[...] = (dinv * h).astype(g_out_ref.dtype)   # g for next hop
        out_out_ref[...] = out_in_ref[...] + coef * h


def _final_proj_kernel(h_ref, w_ref, b_ref, o_ref):
    """Project-last tail: out = h @ W + b."""
    o_ref[...] = (jnp.dot(h_ref[...], w_ref[...].astype(jnp.float32),
                          preferred_element_type=jnp.float32)
                  + b_ref[...].astype(jnp.float32))


# ----------------------------- wrapper -----------------------------

@functools.partial(jax.jit,
                   static_argnames=("K", "alpha", "add_self_loops", "normalize",
                                    "adj_bf16", "tile", "resident_g_bytes"))
def ssg_conv(x, adj, weight, bias=None, *, K=5, alpha=0.1,
             add_self_loops=True, normalize=True, adj_bf16=True, tile=512,
             resident_g_bytes=20 * 2**20):
    """SSGConv forward.

    x: [N, Fin], adj: [N, N] dense adjacency,
    weight: [Fin, Fout] (transposed torch Linear weight), bias: [1, Fout] or None.

    adj_bf16=True streams the adjacency and runs the MXU in bf16 (exact for
    0/1 adjacencies; ~1% relative rounding on the carried features for
    weighted graphs); adj_bf16=False is the exact f32 path.
    """
    f32 = jnp.float32
    N, Fin = x.shape
    Fout = weight.shape[1]
    assert tile % _LANE == 0
    if bias is None:
        bias = jnp.zeros((1, Fout), f32)

    # ---- cheap preprocessing: single fused row-sum over adj (stays in XLA) ----
    sl = 1.0 if (normalize and add_self_loops) else 0.0
    if normalize:
        deg = jnp.sum(adj.astype(f32), axis=1, keepdims=True) + sl   # deg(A [+ I])
        dinv = jnp.where(deg > 0.0, jax.lax.rsqrt(deg), 0.0)         # D^-1/2
    else:
        dinv = jnp.ones((N, 1), f32)

    # ---- tile selection / padding ----
    T = min(tile, _round_up(N, _LANE))
    if N > _LANE:
        # keep >= 2 row tiles where possible so both v7x TensorCores get work
        T = min(T, _round_up((N + 1) // 2, _LANE))
    Np = _round_up(N, T)
    R = Np // T                                   # row tiles == contraction tiles

    project_first = _round_up(Fout, _LANE) <= _round_up(Fin, _LANE)
    Fp = _round_up(Fout if project_first else Fin, _LANE)   # propagated width

    adj_dtype = jnp.bfloat16 if adj_bf16 else f32
    g_dtype = jnp.bfloat16 if adj_bf16 else f32
    pad_n = Np - N

    # fused cast+pad; no pad at all when N is already tile-aligned
    adj_p = adj.astype(adj_dtype)
    if pad_n:
        adj_p = jnp.pad(adj_p, ((0, pad_n), (0, pad_n)))
    dinv_p = jnp.pad(dinv, ((0, pad_n), (0, 0))) if pad_n else dinv

    row_spec1 = pl.BlockSpec((T, Fp), lambda r: (r, 0))

    # ---- init: h0 (+ projection & bias when projecting first) ----
    if project_first:
        Finp = _round_up(Fin, _LANE)
        x_p = jnp.pad(x.astype(f32), ((0, pad_n), (0, Finp - Fin)))
        w_p = jnp.pad(weight.astype(f32), ((0, Finp - Fin), (0, Fp - Fout)))
        b_p = jnp.pad(bias.astype(f32).reshape(1, Fout), ((0, 0), (0, Fp - Fout)))
        g, out_acc = pl.pallas_call(
            functools.partial(_init_proj_kernel, alpha=float(alpha)),
            out_shape=(jax.ShapeDtypeStruct((Np, Fp), g_dtype),
                       jax.ShapeDtypeStruct((Np, Fp), f32)),
            grid_spec=pl.GridSpec(
                grid=(R,),
                in_specs=[pl.BlockSpec((T, Finp), lambda r: (r, 0)),
                          pl.BlockSpec((Finp, Fp), lambda r: (0, 0)),
                          pl.BlockSpec((1, Fp), lambda r: (0, 0)),
                          pl.BlockSpec((T, 1), lambda r: (r, 0))],
                out_specs=[row_spec1, row_spec1]),
            compiler_params=pltpu.CompilerParams(dimension_semantics=("parallel",)),
        )(x_p, w_p, b_p, dinv_p)
    else:
        x_p = jnp.pad(x.astype(f32), ((0, pad_n), (0, Fp - Fin)))
        g, out_acc = pl.pallas_call(
            functools.partial(_init_raw_kernel, alpha=float(alpha)),
            out_shape=(jax.ShapeDtypeStruct((Np, Fp), g_dtype),
                       jax.ShapeDtypeStruct((Np, Fp), f32)),
            grid_spec=pl.GridSpec(
                grid=(R,),
                in_specs=[pl.BlockSpec((T, Fp), lambda r: (r, 0)),
                          pl.BlockSpec((T, 1), lambda r: (r, 0))],
                out_specs=[row_spec1, row_spec1]),
            compiler_params=pltpu.CompilerParams(dimension_semantics=("parallel",)),
        )(x_p, dinv_p)

    # ---- K propagation hops: stream adj tiles, keep g resident when it fits ----
    adj_item = jnp.dtype(adj_dtype).itemsize
    g_item = jnp.dtype(g_dtype).itemsize
    g_store_bytes = Np * Fp * g_item
    resident = g_store_bytes <= resident_g_bytes   # v7x-safe budget (64 MiB VMEM)

    if resident:
        g_spec = pl.BlockSpec((Np, Fp), lambda r, c: (0, 0))   # fully VMEM-resident
        g_vmem = 2 * g_store_bytes                             # assume double-buffered
    else:
        g_spec = pl.BlockSpec((T, Fp), lambda r, c: (c, 0))    # streamed fallback
        g_vmem = 2 * T * Fp * g_item

    vmem_est = (2 * T * T * adj_item         # adj tile double buffer
                + g_vmem                     # g input
                + 2 * T * Fp * g_item        # g output
                + 4 * T * Fp * 4             # out accumulator in + out
                + 2 * T * _LANE * 4          # dinv (lane padded)
                + T * Fp * 4)                # f32 accumulator scratch
    vmem_limit = max(32 * 2**20, int(vmem_est * 1.25))

    coef = (1.0 - alpha) / K
    row_spec2 = pl.BlockSpec((T, Fp), lambda r, c: (r, 0))
    prop = pl.pallas_call(
        functools.partial(_prop_kernel, coef=float(coef), sl=sl, tile=T,
                          resident=resident),
        out_shape=(jax.ShapeDtypeStruct((Np, Fp), g_dtype),
                   jax.ShapeDtypeStruct((Np, Fp), f32)),
        grid_spec=pltpu.PrefetchScalarGridSpec(
            num_scalar_prefetch=0,
            grid=(R, R),                                        # (rows, contraction)
            in_specs=[pl.BlockSpec((T, T), lambda r, c: (r, c)),  # adj tile
                      g_spec,                                     # carried g
                      pl.BlockSpec((T, 1), lambda r, c: (r, 0)),  # dinv row slice
                      row_spec2],                                 # out accumulator in
            out_specs=[row_spec2,                                 # g_next
                       row_spec2],                                # out accumulator out
            scratch_shapes=[pltpu.VMEM((T, Fp), f32)]),
        input_output_aliases={3: 1},        # out accumulator updated in place
        compiler_params=pltpu.CompilerParams(
            dimension_semantics=("parallel", "arbitrary"),
            vmem_limit_bytes=vmem_limit),
    )
    for _ in range(K):
        g, out_acc = prop(adj_p, g, dinv_p, out_acc)

    # ---- tail projection (only when padded Fout > padded Fin) ----
    if project_first:
        return out_acc[:N, :Fout]

    Foutp = _round_up(Fout, _LANE)
    w_p = jnp.pad(weight.astype(f32), ((0, Fp - Fin), (0, Foutp - Fout)))
    b_p = jnp.pad(bias.astype(f32).reshape(1, Fout), ((0, 0), (0, Foutp - Fout)))
    out = pl.pallas_call(
        _final_proj_kernel,
        out_shape=jax.ShapeDtypeStruct((Np, Foutp), f32),
        grid_spec=pl.GridSpec(
            grid=(R,),
            in_specs=[pl.BlockSpec((T, Fp), lambda r: (r, 0)),
                      pl.BlockSpec((Fp, Foutp), lambda r: (0, 0)),
                      pl.BlockSpec((1, Foutp), lambda r: (0, 0))],
            out_specs=pl.BlockSpec((T, Foutp), lambda r: (r, 0))),
        compiler_params=pltpu.CompilerParams(dimension_semantics=("parallel",)),
    )(out_acc, w_p, b_p)
    return out[:N, :Fout]


# ----------------------------- reference -----------------------------

def ssg_conv_reference(x, adj, weight, bias, *, K=5, alpha=0.1,
                       add_self_loops=True, normalize=True):
    """Pure-JAX mirror of the PyTorch module's dense forward pass."""
    a = adj.astype(jnp.float32)
    n = a.shape[0]
    if normalize:
        if add_self_loops:
            a = a + jnp.eye(n, dtype=jnp.float32)
        deg = a.sum(axis=1, keepdims=True)
        dis = jnp.where(deg > 0.0, deg ** -0.5, 0.0)
        a = dis * a * dis.T
    xf = x.astype(jnp.float32)
    x_out = xf * alpha
    for _ in range(K):
        xf = a @ xf
        x_out = x_out + (1.0 - alpha) / K * xf
    return x_out @ weight + bias


if __name__ == "__main__":
    key = jax.random.PRNGKey(0)

    def make_case(k, N, Fin, Fout):
        k_adj, k_x, k_w, k_b = jax.random.split(k, 4)
        raw = jax.random.bernoulli(k_adj, p=0.3, shape=(N, N)).astype(jnp.float32)
        adj = ((raw + raw.T) > 0).astype(jnp.float32)
        adj = adj * (1.0 - jnp.eye(N, dtype=jnp.float32))      # no pre-existing self loops
        x = jax.random.normal(k_x, (N, Fin), dtype=jnp.float32)
        limit = math.sqrt(6.0 / (Fin + Fout))                  # PyG glorot init
        weight = jax.random.uniform(k_w, (Fin, Fout), jnp.float32, -limit, limit)
        bias = 0.1 * jax.random.normal(k_b, (1, Fout), dtype=jnp.float32)
        return adj, x, weight, bias

    K, alpha = 5, 0.1
    cases = [(16, 8, 4),     # project-first path (padded widths tie)
             (40, 8, 160)]   # padded Fout > padded Fin -> project-last path, N unaligned
    for (N, Fin, Fout), kc in zip(cases, jax.random.split(key, len(cases))):
        adj, x, weight, bias = make_case(kc, N, Fin, Fout)
        ref = ssg_conv_reference(x, adj, weight, bias, K=K, alpha=alpha,
                                 add_self_loops=True, normalize=True)
        # exact f32 path and default bf16 streaming path
        for adj_bf16, tol in ((False, 1e-4), (True, 3e-2)):
            out = ssg_conv(x, adj, weight, bias, K=K, alpha=alpha,
                           add_self_loops=True, normalize=True, adj_bf16=adj_bf16)
            out = jax.block_until_ready(out)
            assert out.shape == (N, Fout)
            assert jnp.allclose(out, ref, rtol=tol, atol=tol), \
                f"mismatch vs reference for N={N}, Fin={Fin}, Fout={Fout}, bf16={adj_bf16}"

    # exercise the streamed-g fallback path (resident budget forced to 0)
    N, Fin, Fout = cases[0]
    adj, x, weight, bias = make_case(jax.random.split(key, len(cases))[0], N, Fin, Fout)
    ref = ssg_conv_reference(x, adj, weight, bias, K=K, alpha=alpha)
    out = ssg_conv(x, adj, weight, bias, K=K, alpha=alpha, adj_bf16=True,
                   resident_g_bytes=0)
    out = jax.block_until_ready(out)
    assert jnp.allclose(out, ref, rtol=3e-2, atol=3e-2), "streamed-g path mismatch"

    print("KERNEL_OK")
</pallas_src>

<mosaic_0001>
module attributes {stable_mosaic.version = 11 : i64} {
  func.func @_init_proj_kernel(%arg0: i32, %arg1: memref<128x128xf32, #tpu.memory_space<vmem>>, %arg2: memref<128x128xf32, #tpu.memory_space<vmem>>, %arg3: memref<1x128xf32, #tpu.memory_space<vmem>>, %arg4: memref<128x1xf32, #tpu.memory_space<vmem>>, %arg5: memref<128x128xf32, #tpu.memory_space<vmem>>, %arg6: memref<128x128xf32, #tpu.memory_space<vmem>>) attributes {dimension_semantics = [#tpu.dimension_semantics<parallel>], iteration_bounds = array<i64: 1>, scalar_prefetch = 0 : i64, scratch_operands = 0 : i64, tpu.core_type = #tpu.core_type<tc>, window_params = [{transform_indices = @transform_0, window_bounds = array<i64: 128, 128>}, {pipeline_mode = #tpu.pipeline_mode<synchronous>, transform_indices = @transform_1, window_bounds = array<i64: 128, 128>}, {pipeline_mode = #tpu.pipeline_mode<synchronous>, transform_indices = @transform_2, window_bounds = array<i64: 1, 128>}, {transform_indices = @transform_3, window_bounds = array<i64: 128, 1>}, {transform_indices = @transform_4, window_bounds = array<i64: 128, 128>}, {transform_indices = @transform_5, window_bounds = array<i64: 128, 128>}]} {
    %c0 = arith.constant 0 : index
    %c0_0 = arith.constant 0 : index
    %0 = vector.load %arg1[%c0, %c0_0] : memref<128x128xf32, #tpu.memory_space<vmem>>, vector<128x128xf32>
    %c0_1 = arith.constant 0 : index
    %c0_2 = arith.constant 0 : index
    %1 = vector.load %arg2[%c0_1, %c0_2] : memref<128x128xf32, #tpu.memory_space<vmem>>, vector<128x128xf32>
    %cst = arith.constant dense<0.000000e+00> : vector<128x128xf32>
    %2 = tpu.matmul %0, %1, %cst {dimension_numbers = #tpu.dot_dimension_numbers<[1], [0], [0], [1], [0, 0, 1, 1], [], []>} : vector<128x128xf32>, vector<128x128xf32>, vector<128x128xf32> -> vector<128x128xf32>
    %cst_3 = arith.constant 1.000000e-01 : f32
    %3 = vector.broadcast %cst_3 : f32 to vector<128x128xf32>
    %4 = arith.mulf %3, %2 : vector<128x128xf32>
    %c0_4 = arith.constant 0 : index
    %c0_5 = arith.constant 0 : index
    %5 = vector.load %arg3[%c0_4, %c0_5] : memref<1x128xf32, #tpu.memory_space<vmem>>, vector<1x128xf32>
    %6 = vector.broadcast %5 : vector<1x128xf32> to vector<128x128xf32>
    %7 = arith.addf %4, %6 : vector<128x128xf32>
    %c0_6 = arith.constant 0 : index
    %c0_7 = arith.constant 0 : index
    %8 = vector.load %arg6[%c0_6, %c0_7] : memref<128x128xf32, #tpu.memory_space<vmem>>, vector<128x128xf32>
    tpu.vector_store %arg6[%c0_6, %c0_7], %7 {strides = array<i32>} : memref<128x128xf32, #tpu.memory_space<vmem>>, vector<128x128xf32>,
    %c0_8 = arith.constant 0 : index
    %c0_9 = arith.constant 0 : index
    %9 = vector.load %arg4[%c0_8, %c0_9] : memref<128x1xf32, #tpu.memory_space<vmem>>, vector<128x1xf32>
    %10 = vector.broadcast %9 : vector<128x1xf32> to vector<128x128xf32>
    %11 = arith.mulf %10, %2 : vector<128x128xf32>
    %c0_10 = arith.constant 0 : index
    %c0_11 = arith.constant 0 : index
    %12 = vector.load %arg5[%c0_10, %c0_11] : memref<128x128xf32, #tpu.memory_space<vmem>>, vector<128x128xf32>
    tpu.vector_store %arg5[%c0_10, %c0_11], %11 {strides = array<i32>} : memref<128x128xf32, #tpu.memory_space<vmem>>, vector<128x128xf32>,
    return
  }
  func.func @transform_0(%arg0: i32) -> (i32, i32) {
    %c0_i32 = arith.constant 0 : i32
    %c0_i32_0 = arith.constant 0 : i32
    return %arg0, %c0_i32 : i32, i32
  }
  func.func @transform_1(%arg0: i32) -> (i32, i32) {
    %c0_i32 = arith.constant 0 : i32
    %c0_i32_0 = arith.constant 0 : i32
    %c0_i32_1 = arith.constant 0 : i32
    return %c0_i32, %c0_i32_0 : i32, i32
  }
  func.func @transform_2(%arg0: i32) -> (i32, i32) {
    %c0_i32 = arith.constant 0 : i32
    %c0_i32_0 = arith.constant 0 : i32
    %c0_i32_1 = arith.constant 0 : i32
    return %c0_i32, %c0_i32_0 : i32, i32
  }
  func.func @transform_3(%arg0: i32) -> (i32, i32) {
    %c0_i32 = arith.constant 0 : i32
    %c0_i32_0 = arith.constant 0 : i32
    return %arg0, %c0_i32 : i32, i32
  }
  func.func @transform_4(%arg0: i32) -> (i32, i32) {
    %c0_i32 = arith.constant 0 : i32
    %c0_i32_0 = arith.constant 0 : i32
    return %arg0, %c0_i32 : i32, i32
  }
  func.func @transform_5(%arg0: i32) -> (i32, i32) {
    %c0_i32 = arith.constant 0 : i32
    %c0_i32_0 = arith.constant 0 : i32
    return %arg0, %c0_i32 : i32, i32
  }
}

module attributes {stable_mosaic.version = 11 : i64} {
  func.func @_prop_kernel(%arg0: i32, %arg1: i32, %arg2: memref<128x128xf32, #tpu.memory_space<vmem>>, %arg3: memref<128x128xf32, #tpu.memory_space<vmem>>, %arg4: memref<128x1xf32, #tpu.memory_space<vmem>>, %arg5: memref<128x128xf32, #tpu.memory_space<vmem>>, %arg6: memref<128x128xf32, #tpu.memory_space<vmem>>, %arg7: memref<128x128xf32, #tpu.memory_space<vmem>>, %arg8: memref<128x128xf32, #tpu.memory_space<vmem>>) attributes {dimension_semantics = [#tpu.dimension_semantics<parallel>, #tpu.dimension_semantics<arbitrary>], iteration_bounds = array<i64: 1, 1>, scalar_prefetch = 0 : i64, scratch_operands = 1 : i64, tpu.core_type = #tpu.core_type<tc>, window_params = [{transform_indices = @transform_0, window_bounds = array<i64: 128, 128>}, {pipeline_mode = #tpu.pipeline_mode<synchronous>, transform_indices = @transform_1, window_bounds = array<i64: 128, 128>}, {transform_indices = @transform_2, window_bounds = array<i64: 128, 1>}, {transform_indices = @transform_3, window_bounds = array<i64: 128, 128>}, {transform_indices = @transform_4, window_bounds = array<i64: 128, 128>}, {transform_indices = @transform_5, window_bounds = array<i64: 128, 128>}]} {
    %c0_i32 = arith.constant 0 : i32
    %0 = arith.cmpi eq, %arg1, %c0_i32 : i32
    %1 = arith.extui %0 : i1 to i32
    %c0_i32_0 = arith.constant 0 : i32
    %2 = arith.cmpi ne, %1, %c0_i32_0 : i32
    scf.if %2 {
      %cst_10 = arith.constant 0.000000e+00 : f32
      %18 = vector.broadcast %cst_10 : f32 to vector<128x128xf32>
      %c0_11 = arith.constant 0 : index
      %c0_12 = arith.constant 0 : index
      %19 = vector.load %arg8[%c0_11, %c0_12] : memref<128x128xf32, #tpu.memory_space<vmem>>, vector<128x128xf32>
      tpu.vector_store %arg8[%c0_11, %c0_12], %18 {strides = array<i32>} : memref<128x128xf32, #tpu.memory_space<vmem>>, vector<128x128xf32>,
    } else {
    }
    %c0 = arith.constant 0 : index
    %c0_1 = arith.constant 0 : index
    %3 = vector.load %arg2[%c0, %c0_1] : memref<128x128xf32, #tpu.memory_space<vmem>>, vector<128x128xf32>
    %c128_i32 = arith.constant 128 : i32
    %4 = arith.muli %arg1, %c128_i32 : i32
    %5 = tpu.assume_multiple %4, 128 : i32
    %6 = arith.index_cast %5 : i32 to index
    %c0_2 = arith.constant 0 : index
    %7 = vector.load %arg3[%6, %c0_2] : memref<128x128xf32, #tpu.memory_space<vmem>>, vector<128x128xf32>
    %c0_3 = arith.constant 0 : index
    %c0_4 = arith.constant 0 : index
    %8 = vector.load %arg8[%c0_3, %c0_4] : memref<128x128xf32, #tpu.memory_space<vmem>>, vector<128x128xf32>
    %cst = arith.constant dense<0.000000e+00> : vector<128x128xf32>
    %9 = tpu.matmul %3, %7, %cst {dimension_numbers = #tpu.dot_dimension_numbers<[1], [0], [0], [1], [0, 0, 1, 1], [], []>} : vector<128x128xf32>, vector<128x128xf32>, vector<128x128xf32> -> vector<128x128xf32>
    %10 = arith.addf %8, %9 : vector<128x128xf32>
    %c0_5 = arith.constant 0 : index
    %c0_6 = arith.constant 0 : index
    %11 = vector.load %arg8[%c0_5, %c0_6] : memref<128x128xf32, #tpu.memory_space<vmem>>, vector<128x128xf32>
    tpu.vector_store %arg8[%c0_5, %c0_6], %10 {strides = array<i32>} : memref<128x128xf32, #tpu.memory_space<vmem>>, vector<128x128xf32>,
    %12 = arith.cmpi eq, %arg1, %arg0 : i32
    %13 = arith.extui %12 : i1 to i32
    %c0_i32_7 = arith.constant 0 : i32
    %14 = arith.cmpi ne, %13, %c0_i32_7 : i32
    scf.if %14 {
      %c0_10 = arith.constant 0 : index
      %c0_11 = arith.constant 0 : index
      %18 = vector.load %arg8[%c0_10, %c0_11] : memref<128x128xf32, #tpu.memory_space<vmem>>, vector<128x128xf32>
      %cst_12 = arith.constant 1.000000e+00 : f32
      %19 = vector.broadcast %cst_12 : f32 to vector<128x128xf32>
      %20 = arith.mulf %19, %7 : vector<128x128xf32>
      %21 = arith.addf %18, %20 : vector<128x128xf32>
      %c0_13 = arith.constant 0 : index
      %c0_14 = arith.constant 0 : index
      %22 = vector.load %arg8[%c0_13, %c0_14] : memref<128x128xf32, #tpu.memory_space<vmem>>, vector<128x128xf32>
      tpu.vector_store %arg8[%c0_13, %c0_14], %21 {strides = array<i32>} : memref<128x128xf32, #tpu.memory_space<vmem>>, vector<128x128xf32>,
    } else {
    }
    %c0_i32_8 = arith.constant 0 : i32
    %15 = arith.cmpi eq, %arg1, %c0_i32_8 : i32
    %16 = arith.extui %15 : i1 to i32
    %c0_i32_9 = arith.constant 0 : i32
    %17 = arith.cmpi ne, %16, %c0_i32_9 : i32
    scf.if %17 {
      %c0_10 = arith.constant 0 : index
      %c0_11 = arith.constant 0 : index
      %18 = vector.load %arg4[%c0_10, %c0_11] : memref<128x1xf32, #tpu.memory_space<vmem>>, vector<128x1xf32>
      %c0_12 = arith.constant 0 : index
      %c0_13 = arith.constant 0 : index
      %19 = vector.load %arg8[%c0_12, %c0_13] : memref<128x128xf32, #tpu.memory_space<vmem>>, vector<128x128xf32>
      %20 = vector.broadcast %18 : vector<128x1xf32> to vector<128x128xf32>
      %21 = arith.mulf %20, %19 : vector<128x128xf32>
      %22 = vector.broadcast %18 : vector<128x1xf32> to vector<128x128xf32>
      %23 = arith.mulf %22, %21 : vector<128x128xf32>
      %c0_14 = arith.constant 0 : index
      %c0_15 = arith.constant 0 : index
      %24 = vector.load %arg6[%c0_14, %c0_15] : memref<128x128xf32, #tpu.memory_space<vmem>>, vector<128x128xf32>
      tpu.vector_store %arg6[%c0_14, %c0_15], %23 {strides = array<i32>} : memref<128x128xf32, #tpu.memory_space<vmem>>, vector<128x128xf32>,
      %c0_16 = arith.constant 0 : index
      %c0_17 = arith.constant 0 : index
      %25 = vector.load %arg5[%c0_16, %c0_17] : memref<128x128xf32, #tpu.memory_space<vmem>>, vector<128x128xf32>
      %cst_18 = arith.constant 1.800000e-01 : f32
      %26 = vector.broadcast %cst_18 : f32 to vector<128x128xf32>
      %27 = arith.mulf %26, %21 : vector<128x128xf32>
      %28 = arith.addf %25, %27 : vector<128x128xf32>
      %c0_19 = arith.constant 0 : index
      %c0_20 = arith.constant 0 : index
      %29 = vector.load %arg7[%c0_19, %c0_20] : memref<128x128xf32, #tpu.memory_space<vmem>>, vector<128x128xf32>
      tpu.vector_store %arg7[%c0_19, %c0_20], %28 {strides = array<i32>} : memref<128x128xf32, #tpu.memory_space<vmem>>, vector<128x128xf32>,
    } else {
    }
    return
  }
  func.func @transform_0(%arg0: i32, %arg1: i32) -> (i32, i32) {
    %c0_i32 = arith.constant 0 : i32
    return %arg0, %arg1 : i32, i32
  }
  func.func @transform_1(%arg0: i32, %arg1: i32) -> (i32, i32) {
    %c0_i32 = arith.constant 0 : i32
    %c0_i32_0 = arith.constant 0 : i32
    %c0_i32_1 = arith.constant 0 : i32
    return %c0_i32, %c0_i32_0 : i32, i32
  }
  func.func @transform_2(%arg0: i32, %arg1: i32) -> (i32, i32) {
    %c0_i32 = arith.constant 0 : i32
    %c0_i32_0 = arith.constant 0 : i32
    return %arg0, %c0_i32 : i32, i32
  }
  func.func @transform_3(%arg0: i32, %arg1: i32) -> (i32, i32) {
    %c0_i32 = arith.constant 0 : i32
    %c0_i32_0 = arith.constant 0 : i32
    return %arg0, %c0_i32 : i32, i32
  }
  func.func @transform_4(%arg0: i32, %arg1: i32) -> (i32, i32) {
    %c0_i32 = arith.constant 0 : i32
    %c0_i32_0 = arith.constant 0 : i32
    return %arg0, %c0_i32 : i32, i32
  }
  func.func @transform_5(%arg0: i32, %arg1: i32) -> (i32, i32) {
    %c0_i32 = arith.constant 0 : i32
    %c0_i32_0 = arith.constant 0 : i32
    return %arg0, %c0_i32 : i32, i32
  }
}

module attributes {stable_mosaic.version = 11 : i64} {
  func.func @_prop_kernel(%arg0: i32, %arg1: i32, %arg2: memref<128x128xf32, #tpu.memory_space<vmem>>, %arg3: memref<128x128xf32, #tpu.memory_space<vmem>>, %arg4: memref<128x1xf32, #tpu.memory_space<vmem>>, %arg5: memref<128x128xf32, #tpu.memory_space<vmem>>, %arg6: memref<128x128xf32, #tpu.memory_space<vmem>>, %arg7: memref<128x128xf32, #tpu.memory_space<vmem>>, %arg8: memref<128x128xf32, #tpu.memory_space<vmem>>) attributes {dimension_semantics = [#tpu.dimension_semantics<parallel>, #tpu.dimension_semantics<arbitrary>], iteration_bounds = array<i64: 1, 1>, scalar_prefetch = 0 : i64, scratch_operands = 1 : i64, tpu.core_type = #tpu.core_type<tc>, window_params = [{transform_indices = @transform_0, window_bounds = array<i64: 128, 128>}, {pipeline_mode = #tpu.pipeline_mode<synchronous>, transform_indices = @transform_1, window_bounds = array<i64: 128, 128>}, {transform_indices = @transform_2, window_bounds = array<i64: 128, 1>}, {transform_indices = @transform_3, window_bounds = array<i64: 128, 128>}, {transform_indices = @transform_4, window_bounds = array<i64: 128, 128>}, {transform_indices = @transform_5, window_bounds = array<i64: 128, 128>}]} {
    %c0_i32 = arith.constant 0 : i32
    %0 = arith.cmpi eq, %arg1, %c0_i32 : i32
    %1 = arith.extui %0 : i1 to i32
    %c0_i32_0 = arith.constant 0 : i32
    %2 = arith.cmpi ne, %1, %c0_i32_0 : i32
    scf.if %2 {
      %cst_10 = arith.constant 0.000000e+00 : f32
      %18 = vector.broadcast %cst_10 : f32 to vector<128x128xf32>
      %c0_11 = arith.constant 0 : index
      %c0_12 = arith.constant 0 : index
      %19 = vector.load %arg8[%c0_11, %c0_12] : memref<128x128xf32, #tpu.memory_space<vmem>>, vector<128x128xf32>
      tpu.vector_store %arg8[%c0_11, %c0_12], %18 {strides = array<i32>} : memref<128x128xf32, #tpu.memory_space<vmem>>, vector<128x128xf32>,
    } else {
    }
    %c0 = arith.constant 0 : index
    %c0_1 = arith.constant 0 : index
    %3 = vector.load %arg2[%c0, %c0_1] : memref<128x128xf32, #tpu.memory_space<vmem>>, vector<128x128xf32>
    %c128_i32 = arith.constant 128 : i32
    %4 = arith.muli %arg1, %c128_i32 : i32
    %5 = tpu.assume_multiple %4, 128 : i32
    %6 = arith.index_cast %5 : i32 to index
    %c0_2 = arith.constant 0 : index
    %7 = vector.load %arg3[%6, %c0_2] : memref<128x128xf32, #tpu.memory_space<vmem>>, vector<128x128xf32>
    %c0_3 = arith.constant 0 : index
    %c0_4 = arith.constant 0 : index
    %8 = vector.load %arg8[%c0_3, %c0_4] : memref<128x128xf32, #tpu.memory_space<vmem>>, vector<128x128xf32>
    %cst = arith.constant dense<0.000000e+00> : vector<128x128xf32>
    %9 = tpu.matmul %3, %7, %cst {dimension_numbers = #tpu.dot_dimension_numbers<[1], [0], [0], [1], [0, 0, 1, 1], [], []>} : vector<128x128xf32>, vector<128x128xf32>, vector<128x128xf32> -> vector<128x128xf32>
    %10 = arith.addf %8, %9 : vector<128x128xf32>
    %c0_5 = arith.constant 0 : index
    %c0_6 = arith.constant 0 : index
    %11 = vector.load %arg8[%c0_5, %c0_6] : memref<128x128xf32, #tpu.memory_space<vmem>>, vector<128x128xf32>
    tpu.vector_store %arg8[%c0_5, %c0_6], %10 {strides = array<i32>} : memref<128x128xf32, #tpu.memory_space<vmem>>, vector<128x128xf32>,
    %12 = arith.cmpi eq, %arg1, %arg0 : i32
    %13 = arith.extui %12 : i1 to i32
    %c0_i32_7 = arith.constant 0 : i32
    %14 = arith.cmpi ne, %13, %c0_i32_7 : i32
    scf.if %14 {
      %c0_10 = arith.constant 0 : index
      %c0_11 = arith.constant 0 : index
      %18 = vector.load %arg8[%c0_10, %c0_11] : memref<128x128xf32, #tpu.memory_space<vmem>>, vector<128x128xf32>
      %cst_12 = arith.constant 1.000000e+00 : f32
      %19 = vector.broadcast %cst_12 : f32 to vector<128x128xf32>
      %20 = arith.mulf %19, %7 : vector<128x128xf32>
      %21 = arith.addf %18, %20 : vector<128x128xf32>
      %c0_13 = arith.constant 0 : index
      %c0_14 = arith.constant 0 : index
      %22 = vector.load %arg8[%c0_13, %c0_14] : memref<128x128xf32, #tpu.memory_space<vmem>>, vector<128x128xf32>
      tpu.vector_store %arg8[%c0_13, %c0_14], %21 {strides = array<i32>} : memref<128x128xf32, #tpu.memory_space<vmem>>, vector<128x128xf32>,
    } else {
    }
    %c0_i32_8 = arith.constant 0 : i32
    %15 = arith.cmpi eq, %arg1, %c0_i32_8 : i32
    %16 = arith.extui %15 : i1 to i32
    %c0_i32_9 = arith.constant 0 : i32
    %17 = arith.cmpi ne, %16, %c0_i32_9 : i32
    scf.if %17 {
      %c0_10 = arith.constant 0 : index
      %c0_11 = arith.constant 0 : index
      %18 = vector.load %arg4[%c0_10, %c0_11] : memref<128x1xf32, #tpu.memory_space<vmem>>, vector<128x1xf32>
      %c0_12 = arith.constant 0 : index
      %c0_13 = arith.constant 0 : index
      %19 = vector.load %arg8[%c0_12, %c0_13] : memref<128x128xf32, #tpu.memory_space<vmem>>, vector<128x128xf32>
      %20 = vector.broadcast %18 : vector<128x1xf32> to vector<128x128xf32>
      %21 = arith.mulf %20, %19 : vector<128x128xf32>
      %22 = vector.broadcast %18 : vector<128x1xf32> to vector<128x128xf32>
      %23 = arith.mulf %22, %21 : vector<128x128xf32>
      %c0_14 = arith.constant 0 : index
      %c0_15 = arith.constant 0 : index
      %24 = vector.load %arg6[%c0_14, %c0_15] : memref<128x128xf32, #tpu.memory_space<vmem>>, vector<128x128xf32>
      tpu.vector_store %arg6[%c0_14, %c0_15], %23 {strides = array<i32>} : memref<128x128xf32, #tpu.memory_space<vmem>>, vector<128x128xf32>,
      %c0_16 = arith.constant 0 : index
      %c0_17 = arith.constant 0 : index
      %25 = vector.load %arg5[%c0_16, %c0_17] : memref<128x128xf32, #tpu.memory_space<vmem>>, vector<128x128xf32>
      %cst_18 = arith.constant 1.800000e-01 : f32
      %26 = vector.broadcast %cst_18 : f32 to vector<128x128xf32>
      %27 = arith.mulf %26, %21 : vector<128x128xf32>
      %28 = arith.addf %25, %27 : vector<128x128xf32>
      %c0_19 = arith.constant 0 : index
      %c0_20 = arith.constant 0 : index
      %29 = vector.load %arg7[%c0_19, %c0_20] : memref<128x128xf32, #tpu.memory_space<vmem>>, vector<128x128xf32>
      tpu.vector_store %arg7[%c0_19, %c0_20], %28 {strides = array<i32>} : memref<128x128xf32, #tpu.memory_space<vmem>>, vector<128x128xf32>,
    } else {
    }
    return
  }
  func.func @transform_0(%arg0: i32, %arg1: i32) -> (i32, i32) {
    %c0_i32 = arith.constant 0 : i32
    return %arg0, %arg1 : i32, i32
  }
  func.func @transform_1(%arg0: i32, %arg1: i32) -> (i32, i32) {
    %c0_i32 = arith.constant 0 : i32
    %c0_i32_0 = arith.constant 0 : i32
    %c0_i32_1 = arith.constant 0 : i32
    return %c0_i32, %c0_i32_0 : i32, i32
  }
  func.func @transform_2(%arg0: i32, %arg1: i32) -> (i32, i32) {
    %c0_i32 = arith.constant 0 : i32
    %c0_i32_0 = arith.constant 0 : i32
    return %arg0, %c0_i32 : i32, i32
  }
  func.func @transform_3(%arg0: i32, %arg1: i32) -> (i32, i32) {
    %c0_i32 = arith.constant 0 : i32
    %c0_i32_0 = arith.constant 0 : i32
    return %arg0, %c0_i32 : i32, i32
  }
  func.func @transform_4(%arg0: i32, %arg1: i32) -> (i32, i32) {
    %c0_i32 = arith.constant 0 : i32
    %c0_i32_0 = arith.constant 0 : i32
    return %arg0, %c0_i32 : i32, i32
  }
  func.func @transform_5(%arg0: i32, %arg1: i32) -> (i32, i32) {
    %c0_i32 = arith.constant 0 : i32
    %c0_i32_0 = arith.constant 0 : i32
    return %arg0, %c0_i32 : i32, i32
  }
}

</mosaic_0001>

<bundles_post_ra>
// kernel: ssg_conv.6
= control target key start
LH: loop header
LB: loop body
LE: loop exit
PB: predicated region body
PF: predicated region fallthrough
CT: control target
= control target key end

     0   :  { %v527_v3 = vmov 0   ;;  %s831_s1 = inlined_call_operand.vmem [shape: f32[128,128], index: 1, kind: input, shape index: {}]   ;;  %s832_s0 = inlined_call_operand.vmem [shape: f32[128,128], index: 0, kind: input, shape index: {}]   ;;  %s833_s3 = inlined_call_operand.vmem [shape: f32[128,1], index: 3, kind: input, shape index: {}]   ;;  %s834_s2 = inlined_call_operand.vmem [shape: f32[1,128], index: 2, kind: input, shape index: {}]   ;;  %s835_s4 = inlined_call_operand.vmem [shape: f32[128,128], index: 4, kind: output, shape index: {0}]   ;;  %s836_s5 = inlined_call_operand.vmem [shape: f32[128,128], index: 5, kind: output, shape index: {1}]  }
   0x1   :  { %v35_v0 = vld [vmem:[%s831_s1] sm:$0xff]  ;;  %v36_v1 = vld [vmem:[%s831_s1 + $0x8] sm:$0xff]  ;;  %v37_v2 = vld [vmem:[%s831_s1 + $0x10] sm:$0xff]  ;;  %526 = vset.pattern.permute.xlu1 %v527_v3  ;;  %525 = vset.pattern.permute.xlu0 %v527_v3 }
   0x2   :  { %v476_v4 = vpack.c.bf16 %v36_v1, %v35_v0  ;;  %v38_v5 = vld [vmem:[%s831_s1 + $0x18] sm:$0xff]  ;;  %v39_v7 = vld [vmem:[%s831_s1 + $0x20] sm:$0xff]  ;;  %v40_v8 = vld [vmem:[%s831_s1 + $0x28] sm:$0xff] }
   0x3   :  { %v480_v6 = vpack.c.bf16 %v38_v5, %v37_v2  ;;  %v484_v9 = vpack.c.bf16 %v40_v8, %v39_v7  ;;  %v19_v10 = vld [vmem:[%s832_s0] sm:$0xff]  ;;  %v41_v12 = vld [vmem:[%s831_s1 + $0x30] sm:$0xff]  ;;  %v42_v13 = vld [vmem:[%s831_s1 + $0x38] sm:$0xff] }
   0x4   :  { %477 = vmatprep.subr.bf16.mxu0 %v476_v4  ;;  %508 = vmatprep.subr.bf16.mxu1 %v476_v4  ;;  %v27_v11 = vld [vmem:[%s832_s0 + $0x40] sm:$0xff]  ;;  %v488_v14 = vpack.c.bf16 %v42_v13, %v41_v12  ;;  %v44_v16 = vld [vmem:[%s831_s1 + $0x48] sm:$0xff]  ;;  %v253_v17 = vld [vmem:[%s833_s3 + $0x10] sm:$0xff] }
   0x5   :  { %479 = vmatpush3.bf16.msra.mxu0 %v476_v4  ;;  %516 = vmatpush3.bf16.msra.mxu1 %v476_v4  ;;  %v43_v15 = vld [vmem:[%s831_s1 + $0x40] sm:$0xff]  ;;  %v254_v19 = vld [vmem:[%s833_s3 + $0x18] sm:$0xff]  ;;  %v45_v21 = vld [vmem:[%s831_s1 + $0x50] sm:$0xff] }
   0x6   :  { %481 = vmatprep.subr.bf16.mxu0 %v480_v6  ;;  %509 = vmatprep.subr.bf16.mxu1 %v480_v6  ;;  %v251_v18 = vld [vmem:[%s833_s3] sm:$0xff]  ;;  %v492_v20 = vpack.c.bf16 %v44_v16, %v43_v15  ;;  %v46_v22 = vld [vmem:[%s831_s1 + $0x58] sm:$0xff]  ;;  %v252_v23 = vld [vmem:[%s833_s3 + $0x8] sm:$0xff] }
   0x7   :  { %452 = vmatprep.mubr.f32.mxu0 %v19_v10  ;;  %464 = vmatprep.mubr.f32.mxu1 %v27_v11  ;;  %v256_v24 = vld [vmem:[%s833_s3 + $0x28] sm:$0xff]  ;;  %v496_v25 = vpack.c.bf16 %v46_v22, %v45_v21  ;;  %v47_v26 = vld [vmem:[%s831_s1 + $0x60] sm:$0xff]  ;;  %v258_v29 = vld [vmem:[%s833_s3 + $0x38] sm:$0xff] }
   0x8   :  { %279 = vperm.xlu1 %526, %v253_v17   ;;  %269 = vperm.xlu0 %525, %v251_v18   ;;  %v48_v27 = vld [vmem:[%s831_s1 + $0x68] sm:$0xff]  ;;  %v255_v28 = vld [vmem:[%s833_s3 + $0x20] sm:$0xff]  ;;  %v49_v31 = vld [vmem:[%s831_s1 + $0x70] sm:$0xff] }
   0x9   :  { %483 = vmatpush3.bf16.msra.mxu0 %v480_v6  ;;  %517 = vmatpush3.bf16.msra.mxu1 %v480_v6  ;;  %v500_v30 = vpack.c.bf16 %v48_v27, %v47_v26  ;;  %v50_v32 = vld [vmem:[%s831_s1 + $0x78] sm:$0xff]  ;;  %v257_v33 = vld [vmem:[%s833_s3 + $0x30] sm:$0xff]  ;;  %v260_v34 = vld [vmem:[%s833_s3 + $0x48] sm:$0xff] }
   0xa   :  { %485 = vmatprep.subr.bf16.mxu0 %v484_v9  ;;  %510 = vmatprep.subr.bf16.mxu1 %v484_v9  ;;  %v504_v35 = vpack.c.bf16 %v50_v32, %v49_v31  ;;  %v259_v36 = vld [vmem:[%s833_s3 + $0x40] sm:$0xff]  ;;  %v262_v37 = vld [vmem:[%s833_s3 + $0x58] sm:$0xff]  ;;  %v261_v38 = vld [vmem:[%s833_s3 + $0x50] sm:$0xff] }
   0xb   :  { %v20_v39 = vld [vmem:[%s832_s0 + $0x8] sm:$0xff]  ;;  %v21_v41 = vld [vmem:[%s832_s0 + $0x10] sm:$0xff]  ;;  %v263_v44 = vld [vmem:[%s833_s3 + $0x60] sm:$0xff] }
   0xc   :  { %284 = vperm.xlu1 %526, %v254_v19   ;;  %274 = vperm.xlu0 %525, %v252_v23   ;;  %v28_v40 = vld [vmem:[%s832_s0 + $0x48] sm:$0xff]  ;;  %v29_v42 = vld [vmem:[%s832_s0 + $0x50] sm:$0xff]  ;;  %v22_v45 = vld [vmem:[%s832_s0 + $0x18] sm:$0xff] }
   0xd   :  { %487 = vmatpush3.bf16.msra.mxu0 %v484_v9  ;;  %518 = vmatpush3.bf16.msra.mxu1 %v484_v9  ;;  %v264_v43 = vld [vmem:[%s833_s3 + $0x68] sm:$0xff]  ;;  %v30_v46 = vld [vmem:[%s832_s0 + $0x58] sm:$0xff]  ;;  %v23_v47 = vld [vmem:[%s832_s0 + $0x20] sm:$0xff] }
   0xe   :  { %489 = vmatprep.subr.bf16.mxu0 %v488_v14  ;;  %511 = vmatprep.subr.bf16.mxu1 %v488_v14  ;;  %v31_v48 = vld [vmem:[%s832_s0 + $0x60] sm:$0xff]  ;;  %v266_v49 = vld [vmem:[%s833_s3 + $0x78] sm:$0xff]  ;;  %v265_v50 = vld [vmem:[%s833_s3 + $0x70] sm:$0xff] }
   0xf   :  { %v24_v51 = vld [vmem:[%s832_s0 + $0x28] sm:$0xff]  ;;  %v25_v53 = vld [vmem:[%s832_s0 + $0x30] sm:$0xff]  ;;  %v26_v55 = vld [vmem:[%s832_s0 + $0x38] sm:$0xff] }
  0x10   :  { %294 = vperm.xlu1 %526, %v256_v24   ;;  %289 = vperm.xlu0 %525, %v255_v28   ;;  %v32_v52 = vld [vmem:[%s832_s0 + $0x68] sm:$0xff]  ;;  %v33_v54 = vld [vmem:[%s832_s0 + $0x70] sm:$0xff]  ;;  %v34_v56 = vld [vmem:[%s832_s0 + $0x78] sm:$0xff] }
  0x11   :  { %491 = vmatpush3.bf16.msra.mxu0 %v488_v14  ;;  %519 = vmatpush3.bf16.msra.mxu1 %v488_v14  ;;  %v713_v6 = vld [vmem:[%s834_s2] ss:$0 sm:$0xff] }
  0x12   :  { %493 = vmatprep.subr.bf16.mxu0 %v492_v20  ;;  %512 = vmatprep.subr.bf16.mxu1 %v492_v20 }
  0x14   :  { %304 = vperm.xlu1 %526, %v258_v29   ;;  %299 = vperm.xlu0 %525, %v257_v33  }
  0x15   :  { %495 = vmatpush3.bf16.msra.mxu0 %v492_v20  ;;  %520 = vmatpush3.bf16.msra.mxu1 %v492_v20 }
  0x16   :  { %497 = vmatprep.subr.bf16.mxu0 %v496_v25  ;;  %513 = vmatprep.subr.bf16.mxu1 %v496_v25 }
  0x18   :  { %314 = vperm.xlu1 %526, %v260_v34   ;;  %309 = vperm.xlu0 %525, %v259_v36  }
  0x19   :  { %499 = vmatpush3.bf16.msra.mxu0 %v496_v25  ;;  %521 = vmatpush3.bf16.msra.mxu1 %v496_v25 }
  0x1a   :  { %501 = vmatprep.subr.bf16.mxu0 %v500_v30  ;;  %514 = vmatprep.subr.bf16.mxu1 %v500_v30 }
  0x1c   :  { %324 = vperm.xlu1 %526, %v262_v37   ;;  %319 = vperm.xlu0 %525, %v261_v38  }
  0x1d   :  { %503 = vmatpush3.bf16.msra.mxu0 %v500_v30  ;;  %522 = vmatpush3.bf16.msra.mxu1 %v500_v30 }
  0x1e   :  { %505 = vmatprep.subr.bf16.mxu0 %v504_v35  ;;  %515 = vmatprep.subr.bf16.mxu1 %v504_v35 }
  0x20   :  { %334 = vperm.xlu1 %526, %v264_v43   ;;  %329 = vperm.xlu0 %525, %v263_v44  }
  0x21   :  { %507 = vmatpush3.bf16.msra.mxu0 %v504_v35  ;;  %523 = vmatpush3.bf16.msra.mxu1 %v504_v35 }
  0x24   :  { %453 = vmatmul.mubr.f32.vlgmr.msra.gmra.mrb[0].mxu0 %v20_v39  ;;  %465 = vmatmul.mubr.f32.vlgmr.msra.gmra.mrb[0].mxu1 %v28_v40 }
  0x25   :  { %455 = vmatprep.mubr.f32.mxu0 %v21_v41  ;;  %467 = vmatprep.mubr.f32.mxu1 %v29_v42 }
  0x26   :  { %344 = vperm.xlu1 %526, %v266_v49   ;;  %339 = vperm.xlu0 %525, %v265_v50  }
  0x28   :  { %456 = vmatmul.mubr.f32.gmra.mrb[2].mxu0 %v22_v45  ;;  %468 = vmatmul.mubr.f32.gmra.mrb[2].mxu1 %v30_v46 }
  0x29   :  { %458 = vmatprep.mubr.f32.mxu0 %v23_v47  ;;  %470 = vmatprep.mubr.f32.mxu1 %v31_v48 }
  0x2c   :  { %459 = vmatmul.mubr.f32.gmra.mrb[4].mxu0 %v24_v51  ;;  %471 = vmatmul.mubr.f32.gmra.mrb[4].mxu1 %v32_v52 }
  0x2d   :  { %461 = vmatprep.mubr.f32.mxu0 %v25_v53  ;;  %473 = vmatprep.mubr.f32.mxu1 %v33_v54 }
  0x30   :  { %462 = vmatmul.mubr.f32.gmra.mrb[6].mxu0 %v26_v55  ;;  %474 = vmatmul.mubr.f32.gmra.mrb[6].mxu1 %v34_v56 }
  0x87   :  { %v280_v57 = vpop.permute.xlu1 %279  ;;  %v270_v58 = vpop.permute.xlu0 %269 }
  0x8b   :  { %v285_v59 = vpop.permute.xlu1 %284  ;;  %v275_v60 = vpop.permute.xlu0 %274 }
  0x8f   :  { %v702_v61 = vpop.permute.xlu1 %294  ;;  %v704_v62 = vpop.permute.xlu0 %289 }
  0x93   :  { %v706_v63 = vpop.permute.xlu1 %304  ;;  %v708_v0 = vpop.permute.xlu0 %299 }
  0x97   :  { %v315_v1 = vpop.permute.xlu1 %314  ;;  %v310_v2 = vpop.permute.xlu0 %309 }
  0x9b   :  { %v325_v3 = vpop.permute.xlu1 %324  ;;  %v320_v4 = vpop.permute.xlu0 %319 }
  0x9f   :  { %v335_v18 = vpop.permute.xlu1 %334  ;;  %v330_v19 = vpop.permute.xlu0 %329 }
  0xa5   :  { %v345_v52 = vpop.permute.xlu1 %344  ;;  %v340_v53 = vpop.permute.xlu0 %339 }
  0xf7   :  { %v454_v5 = vpop.f32.mrb[0].mxu0  ;;  %v466_v7 = vpop.f32.mrb[0].mxu1 }
  0xf8   :  { %v197_v8 = vmul.f32 0.1, %v454_v5  ;;  %v348_v9 = vmul.f32 %v454_v5, %v275_v60  ;;  %v205_v10 = vmul.f32 0.1, %v466_v7  ;;  %v356_v11 = vmul.f32 %v466_v7, %v315_v1  ;;  %v117_v12 = vpop.f32.mrb[1].mxu0  ;;  %v157_v13 = vpop.f32.mrb[1].mxu1 }
  0xf9   :  { %v196_v14 = vmul.f32 0.1, %v117_v12  ;;  %v347_v15 = vmul.f32 %v270_v58, %v117_v12  ;;  %v204_v16 = vmul.f32 0.1, %v157_v13  ;;  %v355_v17 = vmul.f32 %v310_v2, %v157_v13 }
  0xfa   :  { %v220_v20 = vadd.f32 %v713_v6, %v197_v8  ;;  %364 = vst [vmem:[%s835_s4 + $0x8] sm:$0xff] %v348_v9  ;;  %v228_v21 = vadd.f32 %v713_v6, %v205_v10  ;;  %372 = vst [vmem:[%s835_s4 + $0x48] sm:$0xff] %v356_v11 }
  0xfb   :  { %v219_v22 = vadd.f32 %v713_v6, %v196_v14  ;;  %363 = vst [vmem:[%s835_s4] sm:$0xff] %v347_v15  ;;  %v227_v23 = vadd.f32 %v713_v6, %v204_v16  ;;  %371 = vst [vmem:[%s835_s4 + $0x40] sm:$0xff] %v355_v17  ;;  %v457_v24 = vpop.f32.mrb[2].mxu0  ;;  %v469_v25 = vpop.f32.mrb[2].mxu1 }
  0xfc   :  { %236 = vst [vmem:[%s836_s5 + $0x8] sm:$0xff] %v220_v20  ;;  %244 = vst [vmem:[%s836_s5 + $0x48] sm:$0xff] %v228_v21  ;;  %v199_v26 = vmul.f32 0.1, %v457_v24  ;;  %v350_v27 = vmul.f32 %v457_v24, %v285_v59  ;;  %v207_v28 = vmul.f32 0.1, %v469_v25  ;;  %v358_v29 = vmul.f32 %v469_v25, %v325_v3 }
  0xfd   :  { %v127_v30 = vpop.f32.mrb[3].mxu0  ;;  %v167_v31 = vpop.f32.mrb[3].mxu1  ;;  %235 = vst [vmem:[%s836_s5] sm:$0xff] %v219_v22  ;;  %243 = vst [vmem:[%s836_s5 + $0x40] sm:$0xff] %v227_v23 }
  0xfe   :  { %v198_v32 = vmul.f32 0.1, %v127_v30  ;;  %v349_v33 = vmul.f32 %v280_v57, %v127_v30  ;;  %v206_v34 = vmul.f32 0.1, %v167_v31  ;;  %v357_v35 = vmul.f32 %v320_v4, %v167_v31  ;;  %366 = vst [vmem:[%s835_s4 + $0x18] sm:$0xff] %v350_v27  ;;  %374 = vst [vmem:[%s835_s4 + $0x58] sm:$0xff] %v358_v29 }
  0xff   :  { %v222_v36 = vadd.f32 %v713_v6, %v199_v26  ;;  %v230_v37 = vadd.f32 %v713_v6, %v207_v28  ;;  %v460_v40 = vpop.f32.mrb[4].mxu0  ;;  %v472_v41 = vpop.f32.mrb[4].mxu1 }
 0x100   :  { %v221_v38 = vadd.f32 %v713_v6, %v198_v32  ;;  %365 = vst [vmem:[%s835_s4 + $0x10] sm:$0xff] %v349_v33  ;;  %v229_v39 = vadd.f32 %v713_v6, %v206_v34  ;;  %373 = vst [vmem:[%s835_s4 + $0x50] sm:$0xff] %v357_v35  ;;  %v201_v42 = vmul.f32 0.1, %v460_v40  ;;  %v352_v43 = vmul.f32 %v460_v40, %v702_v61  ;;  %v137_v46 = vpop.f32.mrb[5].mxu0  ;;  %v177_v47 = vpop.f32.mrb[5].mxu1 }
 0x101   :  { %238 = vst [vmem:[%s836_s5 + $0x18] sm:$0xff] %v222_v36  ;;  %246 = vst [vmem:[%s836_s5 + $0x58] sm:$0xff] %v230_v37  ;;  %v209_v44 = vmul.f32 0.1, %v472_v41  ;;  %v360_v45 = vmul.f32 %v472_v41, %v335_v18  ;;  %v200_v48 = vmul.f32 0.1, %v137_v46  ;;  %v351_v49 = vmul.f32 %v704_v62, %v137_v46 }
 0x102   :  { %237 = vst [vmem:[%s836_s5 + $0x10] sm:$0xff] %v221_v38  ;;  %245 = vst [vmem:[%s836_s5 + $0x50] sm:$0xff] %v229_v39  ;;  %v208_v50 = vmul.f32 0.1, %v177_v47  ;;  %v359_v51 = vmul.f32 %v330_v19, %v177_v47  ;;  %v224_v54 = vadd.f32 %v713_v6, %v201_v42 }
 0x103   :  { %368 = vst [vmem:[%s835_s4 + $0x28] sm:$0xff] %v352_v43  ;;  %v232_v55 = vadd.f32 %v713_v6, %v209_v44  ;;  %376 = vst [vmem:[%s835_s4 + $0x68] sm:$0xff] %v360_v45  ;;  %v223_v56 = vadd.f32 %v713_v6, %v200_v48  ;;  %v463_v58 = vpop.f32.mrb[6].mxu0  ;;  %v475_v59 = vpop.f32.mrb[6].mxu1 }
 0x104   :  { %367 = vst [vmem:[%s835_s4 + $0x20] sm:$0xff] %v351_v49  ;;  %v231_v57 = vadd.f32 %v713_v6, %v208_v50  ;;  %375 = vst [vmem:[%s835_s4 + $0x60] sm:$0xff] %v359_v51  ;;  %v203_v60 = vmul.f32 0.1, %v463_v58  ;;  %v354_v61 = vmul.f32 %v463_v58, %v706_v63  ;;  %v211_v62 = vmul.f32 0.1, %v475_v59 }
 0x105   :  { %240 = vst [vmem:[%s836_s5 + $0x28] sm:$0xff] %v224_v54  ;;  %248 = vst [vmem:[%s836_s5 + $0x68] sm:$0xff] %v232_v55  ;;  %v362_v1 = vmul.f32 %v475_v59, %v345_v52  ;;  %v147_v2 = vpop.f32.mrb[7].mxu0  ;;  %v187_v3 = vpop.f32.mrb[7].mxu1 }
 0x106   :  { %239 = vst [vmem:[%s836_s5 + $0x20] sm:$0xff] %v223_v56  ;;  %247 = vst [vmem:[%s836_s5 + $0x60] sm:$0xff] %v231_v57  ;;  %v202_v4 = vmul.f32 0.1, %v147_v2  ;;  %v353_v5 = vmul.f32 %v708_v0, %v147_v2  ;;  %v210_v7 = vmul.f32 0.1, %v187_v3  ;;  %v361_v8 = vmul.f32 %v340_v53, %v187_v3 }
 0x107   :  { %v226_v9 = vadd.f32 %v713_v6, %v203_v60  ;;  %370 = vst [vmem:[%s835_s4 + $0x38] sm:$0xff] %v354_v61  ;;  %v234_v63 = vadd.f32 %v713_v6, %v211_v62  ;;  %378 = vst [vmem:[%s835_s4 + $0x78] sm:$0xff] %v362_v1 }
 0x108   :  { %v225_v10 = vadd.f32 %v713_v6, %v202_v4  ;;  %369 = vst [vmem:[%s835_s4 + $0x30] sm:$0xff] %v353_v5  ;;  %v233_v0 = vadd.f32 %v713_v6, %v210_v7  ;;  %377 = vst [vmem:[%s835_s4 + $0x70] sm:$0xff] %v361_v8 }
 0x109   :  { %242 = vst [vmem:[%s836_s5 + $0x38] sm:$0xff] %v226_v9  ;;  %250 = vst [vmem:[%s836_s5 + $0x78] sm:$0xff] %v234_v63 }
 0x10a   :  { %241 = vst [vmem:[%s836_s5 + $0x30] sm:$0xff] %v225_v10  ;;  %249 = vst [vmem:[%s836_s5 + $0x70] sm:$0xff] %v233_v0 }

// kernel: ssg_conv.7
= control target key start
LH: loop header
LB: loop body
LE: loop exit
PB: predicated region body
PF: predicated region fallthrough
CT: control target
= control target key end

     0   :  { %v692_v3 = vmov 0   ;;  %s1103_s1 = inlined_call_operand.vmem [shape: f32[128,128], index: 1, kind: input, shape index: {}]   ;;  %s1104_s0 = inlined_call_operand.vmem [shape: f32[128,128], index: 0, kind: input, shape index: {}]   ;;  %s1105_s2 = inlined_call_operand.vmem [shape: f32[128,1], index: 2, kind: input, shape index: {}]   ;;  %s1106_s3 = inlined_call_operand.vmem [shape: f32[128,128], index: 3, kind: input, shape index: {}, may-alias: {3,5}]   ;;  %s1107_s4 = inlined_call_operand.vmem [shape: f32[128,128], index: 4, kind: output, shape index: {0}]   ;;  %s1108_s5 = inlined_call_operand.vmem [shape: f32[128,128], index: 5, kind: output, shape index: {1}, may-alias: {3,5}]  }
   0x1   :  { %v726_v0 = vld [vmem:[%s1103_s1] sm:$0xff]  ;;  %v731_v1 = vld [vmem:[%s1103_s1 + $0x8] sm:$0xff]  ;;  %v736_v2 = vld [vmem:[%s1103_s1 + $0x10] sm:$0xff]  ;;  %691 = vset.pattern.permute.xlu1 %v692_v3  ;;  %690 = vset.pattern.permute.xlu0 %v692_v3 }
   0x2   :  { %v641_v4 = vpack.c.bf16 %v731_v1, %v726_v0  ;;  %v743_v5 = vld [vmem:[%s1103_s1 + $0x18] sm:$0xff]  ;;  %v750_v7 = vld [vmem:[%s1103_s1 + $0x20] sm:$0xff]  ;;  %v755_v8 = vld [vmem:[%s1103_s1 + $0x28] sm:$0xff] }
   0x3   :  { %v645_v6 = vpack.c.bf16 %v743_v5, %v736_v2  ;;  %v649_v9 = vpack.c.bf16 %v755_v8, %v750_v7  ;;  %v39_v10 = vld [vmem:[%s1104_s0] sm:$0xff]  ;;  %v768_v12 = vld [vmem:[%s1103_s1 + $0x30] sm:$0xff]  ;;  %v773_v13 = vld [vmem:[%s1103_s1 + $0x38] sm:$0xff] }
   0x4   :  { %642 = vmatprep.subr.bf16.mxu0 %v641_v4  ;;  %673 = vmatprep.subr.bf16.mxu1 %v641_v4  ;;  %v47_v11 = vld [vmem:[%s1104_s0 + $0x40] sm:$0xff]  ;;  %v653_v14 = vpack.c.bf16 %v773_v13, %v768_v12  ;;  %v785_v16 = vld [vmem:[%s1103_s1 + $0x48] sm:$0xff]  ;;  %v323_v17 = vld [vmem:[%s1105_s2 + $0x10] sm:$0xff] }
   0x5   :  { %644 = vmatpush3.bf16.msra.mxu0 %v641_v4  ;;  %681 = vmatpush3.bf16.msra.mxu1 %v641_v4  ;;  %v780_v15 = vld [vmem:[%s1103_s1 + $0x40] sm:$0xff]  ;;  %v324_v19 = vld [vmem:[%s1105_s2 + $0x18] sm:$0xff]  ;;  %v801_v21 = vld [vmem:[%s1103_s1 + $0x50] sm:$0xff] }
   0x6   :  { %646 = vmatprep.subr.bf16.mxu0 %v645_v6  ;;  %674 = vmatprep.subr.bf16.mxu1 %v645_v6  ;;  %v321_v18 = vld [vmem:[%s1105_s2] sm:$0xff]  ;;  %v657_v20 = vpack.c.bf16 %v785_v16, %v780_v15  ;;  %v806_v22 = vld [vmem:[%s1103_s1 + $0x58] sm:$0xff]  ;;  %v322_v23 = vld [vmem:[%s1105_s2 + $0x8] sm:$0xff] }
   0x7   :  { %617 = vmatprep.mubr.f32.mxu0 %v39_v10  ;;  %629 = vmatprep.mubr.f32.mxu1 %v47_v11  ;;  %v326_v24 = vld [vmem:[%s1105_s2 + $0x28] sm:$0xff]  ;;  %v661_v25 = vpack.c.bf16 %v806_v22, %v801_v21  ;;  %v819_v26 = vld [vmem:[%s1103_s1 + $0x60] sm:$0xff]  ;;  %v328_v29 = vld [vmem:[%s1105_s2 + $0x38] sm:$0xff] }
   0x8   :  { %365 = vperm.xlu1 %691, %v323_v17   ;;  %355 = vperm.xlu0 %690, %v321_v18   ;;  %v824_v27 = vld [vmem:[%s1103_s1 + $0x68] sm:$0xff]  ;;  %v325_v28 = vld [vmem:[%s1105_s2 + $0x20] sm:$0xff]  ;;  %v837_v31 = vld [vmem:[%s1103_s1 + $0x70] sm:$0xff] }
   0x9   :  { %648 = vmatpush3.bf16.msra.mxu0 %v645_v6  ;;  %682 = vmatpush3.bf16.msra.mxu1 %v645_v6  ;;  %v665_v30 = vpack.c.bf16 %v824_v27, %v819_v26  ;;  %v842_v32 = vld [vmem:[%s1103_s1 + $0x78] sm:$0xff]  ;;  %v327_v33 = vld [vmem:[%s1105_s2 + $0x30] sm:$0xff]  ;;  %v330_v34 = vld [vmem:[%s1105_s2 + $0x48] sm:$0xff] }
   0xa   :  { %650 = vmatprep.subr.bf16.mxu0 %v649_v9  ;;  %675 = vmatprep.subr.bf16.mxu1 %v649_v9  ;;  %v669_v35 = vpack.c.bf16 %v842_v32, %v837_v31  ;;  %v329_v36 = vld [vmem:[%s1105_s2 + $0x40] sm:$0xff]  ;;  %v332_v37 = vld [vmem:[%s1105_s2 + $0x58] sm:$0xff]  ;;  %v331_v38 = vld [vmem:[%s1105_s2 + $0x50] sm:$0xff] }
   0xb   :  { %v40_v39 = vld [vmem:[%s1104_s0 + $0x8] sm:$0xff]  ;;  %v41_v41 = vld [vmem:[%s1104_s0 + $0x10] sm:$0xff]  ;;  %v333_v44 = vld [vmem:[%s1105_s2 + $0x60] sm:$0xff] }
   0xc   :  { %370 = vperm.xlu1 %691, %v324_v19   ;;  %360 = vperm.xlu0 %690, %v322_v23   ;;  %v48_v40 = vld [vmem:[%s1104_s0 + $0x48] sm:$0xff]  ;;  %v49_v42 = vld [vmem:[%s1104_s0 + $0x50] sm:$0xff]  ;;  %v42_v45 = vld [vmem:[%s1104_s0 + $0x18] sm:$0xff] }
   0xd   :  { %652 = vmatpush3.bf16.msra.mxu0 %v649_v9  ;;  %683 = vmatpush3.bf16.msra.mxu1 %v649_v9  ;;  %v334_v43 = vld [vmem:[%s1105_s2 + $0x68] sm:$0xff]  ;;  %v50_v46 = vld [vmem:[%s1104_s0 + $0x58] sm:$0xff]  ;;  %v43_v47 = vld [vmem:[%s1104_s0 + $0x20] sm:$0xff] }
   0xe   :  { %654 = vmatprep.subr.bf16.mxu0 %v653_v14  ;;  %676 = vmatprep.subr.bf16.mxu1 %v653_v14  ;;  %v51_v48 = vld [vmem:[%s1104_s0 + $0x60] sm:$0xff]  ;;  %v336_v49 = vld [vmem:[%s1105_s2 + $0x78] sm:$0xff]  ;;  %v335_v50 = vld [vmem:[%s1105_s2 + $0x70] sm:$0xff] }
   0xf   :  { %v44_v51 = vld [vmem:[%s1104_s0 + $0x28] sm:$0xff]  ;;  %v45_v53 = vld [vmem:[%s1104_s0 + $0x30] sm:$0xff]  ;;  %v46_v55 = vld [vmem:[%s1104_s0 + $0x38] sm:$0xff] }
  0x10   :  { %380 = vperm.xlu1 %691, %v326_v24   ;;  %375 = vperm.xlu0 %690, %v325_v28   ;;  %v52_v52 = vld [vmem:[%s1104_s0 + $0x68] sm:$0xff]  ;;  %v53_v54 = vld [vmem:[%s1104_s0 + $0x70] sm:$0xff]  ;;  %v54_v56 = vld [vmem:[%s1104_s0 + $0x78] sm:$0xff] }
  0x11   :  { %656 = vmatpush3.bf16.msra.mxu0 %v653_v14  ;;  %684 = vmatpush3.bf16.msra.mxu1 %v653_v14  ;;  %v482_v28 = vld [vmem:[%s1106_s3 + $0x8] sm:$0xff] }
  0x12   :  { %658 = vmatprep.subr.bf16.mxu0 %v657_v20  ;;  %677 = vmatprep.subr.bf16.mxu1 %v657_v20 }
  0x14   :  { %390 = vperm.xlu1 %691, %v328_v29   ;;  %385 = vperm.xlu0 %690, %v327_v33  }
  0x15   :  { %660 = vmatpush3.bf16.msra.mxu0 %v657_v20  ;;  %685 = vmatpush3.bf16.msra.mxu1 %v657_v20 }
  0x16   :  { %662 = vmatprep.subr.bf16.mxu0 %v661_v25  ;;  %678 = vmatprep.subr.bf16.mxu1 %v661_v25 }
  0x18   :  { %400 = vperm.xlu1 %691, %v330_v34   ;;  %395 = vperm.xlu0 %690, %v329_v36  }
  0x19   :  { %664 = vmatpush3.bf16.msra.mxu0 %v661_v25  ;;  %686 = vmatpush3.bf16.msra.mxu1 %v661_v25 }
  0x1a   :  { %666 = vmatprep.subr.bf16.mxu0 %v665_v30  ;;  %679 = vmatprep.subr.bf16.mxu1 %v665_v30 }
  0x1c   :  { %410 = vperm.xlu1 %691, %v332_v37   ;;  %405 = vperm.xlu0 %690, %v331_v38  }
  0x1d   :  { %668 = vmatpush3.bf16.msra.mxu0 %v665_v30  ;;  %687 = vmatpush3.bf16.msra.mxu1 %v665_v30 }
  0x1e   :  { %670 = vmatprep.subr.bf16.mxu0 %v669_v35  ;;  %680 = vmatprep.subr.bf16.mxu1 %v669_v35 }
  0x20   :  { %420 = vperm.xlu1 %691, %v334_v43   ;;  %415 = vperm.xlu0 %690, %v333_v44  }
  0x21   :  { %672 = vmatpush3.bf16.msra.mxu0 %v669_v35  ;;  %688 = vmatpush3.bf16.msra.mxu1 %v669_v35 }
  0x24   :  { %618 = vmatmul.mubr.f32.vlgmr.msra.gmra.mrb[0].mxu0 %v40_v39  ;;  %630 = vmatmul.mubr.f32.vlgmr.msra.gmra.mrb[0].mxu1 %v48_v40 }
  0x25   :  { %620 = vmatprep.mubr.f32.mxu0 %v41_v41  ;;  %632 = vmatprep.mubr.f32.mxu1 %v49_v42 }
  0x26   :  { %430 = vperm.xlu1 %691, %v336_v49   ;;  %425 = vperm.xlu0 %690, %v335_v50  }
  0x28   :  { %621 = vmatmul.mubr.f32.gmra.mrb[2].mxu0 %v42_v45  ;;  %633 = vmatmul.mubr.f32.gmra.mrb[2].mxu1 %v50_v46 }
  0x29   :  { %623 = vmatprep.mubr.f32.mxu0 %v43_v47  ;;  %635 = vmatprep.mubr.f32.mxu1 %v51_v48 }
  0x2c   :  { %624 = vmatmul.mubr.f32.gmra.mrb[4].mxu0 %v44_v51  ;;  %636 = vmatmul.mubr.f32.gmra.mrb[4].mxu1 %v52_v52 }
  0x2d   :  { %626 = vmatprep.mubr.f32.mxu0 %v45_v53  ;;  %638 = vmatprep.mubr.f32.mxu1 %v53_v54 }
  0x30   :  { %627 = vmatmul.mubr.f32.gmra.mrb[6].mxu0 %v46_v55  ;;  %639 = vmatmul.mubr.f32.gmra.mrb[6].mxu1 %v54_v56 }
  0x87   :  { %v915_v57 = vpop.permute.xlu1 %365  ;;  %v356_v58 = vpop.permute.xlu0 %355 }
  0x8b   :  { %v917_v59 = vpop.permute.xlu1 %370  ;;  %v361_v60 = vpop.permute.xlu0 %360 }
  0x8f   :  { %v919_v61 = vpop.permute.xlu1 %380  ;;  %v921_v62 = vpop.permute.xlu0 %375 }
  0x93   :  { %v923_v63 = vpop.permute.xlu1 %390  ;;  %v925_v3 = vpop.permute.xlu0 %385 }
  0x97   :  { %v401_v4 = vpop.permute.xlu1 %400  ;;  %v396_v6 = vpop.permute.xlu0 %395 }
  0x9b   :  { %v411_v23 = vpop.permute.xlu1 %410  ;;  %v931_v24 = vpop.permute.xlu0 %405 }
  0xf7   :  { %v619_v9 = vpop.f32.mrb[0].mxu0  ;;  %v631_v10 = vpop.f32.mrb[0].mxu1 }
  0xf8   :  { %v287_v11 = vadd.f32 %v619_v9, %v731_v1  ;;  %v295_v14 = vadd.f32 %v631_v10, %v785_v16  ;;  %v155_v17 = vpop.f32.mrb[1].mxu0  ;;  %v195_v18 = vpop.f32.mrb[1].mxu1  ;;  %v490_v1 = vld [vmem:[%s1106_s3 + $0x48] sm:$0xff] }
  0xf9   :  { %v286_v19 = vadd.f32 %v155_v17, %v726_v0  ;;  %v294_v20 = vadd.f32 %v195_v18, %v780_v15  ;;  %v481_v0 = vld [vmem:[%s1106_s3] sm:$0xff]  ;;  %v421_v9 = vpop.permute.xlu1 %420  ;;  %v416_v10 = vpop.permute.xlu0 %415 }
  0xfa   :  { %v434_v25 = vmul.f32 %v361_v60, %v287_v11  ;;  %v442_v29 = vmul.f32 %v401_v4, %v295_v14  ;;  %v489_v15 = vld [vmem:[%s1106_s3 + $0x40] sm:$0xff] }
  0xfb   :  { %v433_v16 = vmul.f32 %v356_v58, %v286_v19  ;;  %v441_v30 = vmul.f32 %v396_v6, %v294_v20  ;;  %v622_v33 = vpop.f32.mrb[2].mxu0  ;;  %v634_v34 = vpop.f32.mrb[2].mxu1 }
  0xfc   :  { %v450_v35 = vmul.f32 %v434_v25, %v361_v60  ;;  %v498_v36 = vmul.f32 0.18, %v434_v25  ;;  %v458_v37 = vmul.f32 %v442_v29, %v401_v4  ;;  %v506_v38 = vmul.f32 0.18, %v442_v29  ;;  %v165_v39 = vpop.f32.mrb[3].mxu0  ;;  %v205_v40 = vpop.f32.mrb[3].mxu1 }
  0xfd   :  { %v449_v41 = vmul.f32 %v433_v16, %v356_v58  ;;  %v497_v42 = vmul.f32 0.18, %v433_v16  ;;  %v457_v43 = vmul.f32 %v441_v30, %v396_v6  ;;  %v505_v44 = vmul.f32 0.18, %v441_v30 }
  0xfe   :  { %466 = vst [vmem:[%s1107_s4 + $0x8] sm:$0xff] %v450_v35  ;;  %v514_v45 = vadd.f32 %v498_v36, %v482_v28  ;;  %474 = vst [vmem:[%s1107_s4 + $0x48] sm:$0xff] %v458_v37  ;;  %v522_v46 = vadd.f32 %v506_v38, %v490_v1  ;;  %v289_v47 = vadd.f32 %v622_v33, %v743_v5 }
  0xff   :  { %v297_v48 = vadd.f32 %v634_v34, %v806_v22  ;;  %465 = vst [vmem:[%s1107_s4] sm:$0xff] %v449_v41  ;;  %v513_v49 = vadd.f32 %v497_v42, %v481_v0  ;;  %473 = vst [vmem:[%s1107_s4 + $0x40] sm:$0xff] %v457_v43  ;;  %v521_v50 = vadd.f32 %v505_v44, %v489_v15  ;;  %v625_v53 = vpop.f32.mrb[4].mxu0  ;;  %v637_v54 = vpop.f32.mrb[4].mxu1 }
 0x100   :  { %v288_v51 = vadd.f32 %v165_v39, %v736_v2  ;;  %v296_v52 = vadd.f32 %v205_v40, %v801_v21  ;;  %530 = vst [vmem:[%s1108_s5 + $0x8] sm:$0xff] %v514_v45  ;;  %538 = vst [vmem:[%s1108_s5 + $0x48] sm:$0xff] %v522_v46  ;;  %v436_v5 = vmul.f32 %v917_v59, %v289_v47  ;;  %v175_v2 = vpop.f32.mrb[5].mxu0  ;;  %v215_v58 = vpop.f32.mrb[5].mxu1 }
 0x101   :  { %v444_v22 = vmul.f32 %v411_v23, %v297_v48  ;;  %v291_v55 = vadd.f32 %v625_v53, %v755_v8  ;;  %v299_v56 = vadd.f32 %v637_v54, %v824_v27  ;;  %529 = vst [vmem:[%s1108_s5] sm:$0xff] %v513_v49  ;;  %537 = vst [vmem:[%s1108_s5 + $0x40] sm:$0xff] %v521_v50  ;;  %v431_v50 = vpop.permute.xlu1 %430  ;;  %v426_v54 = vpop.permute.xlu0 %425 }
 0x102   :  { %v435_v27 = vmul.f32 %v915_v57, %v288_v51  ;;  %v443_v60 = vmul.f32 %v931_v24, %v296_v52  ;;  %v290_v4 = vadd.f32 %v175_v2, %v750_v7  ;;  %v298_v6 = vadd.f32 %v215_v58, %v819_v26 }
 0x103   :  { %v452_v11 = vmul.f32 %v436_v5, %v917_v59  ;;  %v500_v14 = vmul.f32 0.18, %v436_v5  ;;  %v460_v17 = vmul.f32 %v444_v22, %v411_v23  ;;  %v508_v18 = vmul.f32 0.18, %v444_v22  ;;  %v628_v29 = vpop.f32.mrb[6].mxu0  ;;  %v640_v1 = vpop.f32.mrb[6].mxu1 }
 0x104   :  { %v451_v25 = vmul.f32 %v435_v27, %v915_v57  ;;  %v499_v7 = vmul.f32 0.18, %v435_v27  ;;  %v459_v26 = vmul.f32 %v443_v60, %v931_v24  ;;  %v507_v28 = vmul.f32 0.18, %v443_v60  ;;  %v185_v57 = vpop.f32.mrb[7].mxu0  ;;  %v225_v30 = vpop.f32.mrb[7].mxu1 }
 0x105   :  { %468 = vst [vmem:[%s1107_s4 + $0x18] sm:$0xff] %v452_v11  ;;  %476 = vst [vmem:[%s1107_s4 + $0x58] sm:$0xff] %v460_v17  ;;  %v438_v16 = vmul.f32 %v919_v61, %v291_v55  ;;  %v446_v0 = vmul.f32 %v421_v9, %v299_v56  ;;  %v437_v35 = vmul.f32 %v921_v62, %v290_v4 }
 0x106   :  { %467 = vst [vmem:[%s1107_s4 + $0x10] sm:$0xff] %v451_v25  ;;  %475 = vst [vmem:[%s1107_s4 + $0x50] sm:$0xff] %v459_v26  ;;  %v445_v36 = vmul.f32 %v416_v10, %v298_v6  ;;  %v293_v48 = vadd.f32 %v628_v29, %v773_v13  ;;  %v301_v49 = vadd.f32 %v640_v1, %v842_v32 }
 0x107   :  { %v454_v37 = vmul.f32 %v438_v16, %v919_v61  ;;  %v502_v38 = vmul.f32 0.18, %v438_v16  ;;  %v462_v39 = vmul.f32 %v446_v0, %v421_v9  ;;  %v510_v40 = vmul.f32 0.18, %v446_v0 }
 0x108   :  { %v484_v21 = vld [vmem:[%s1106_s3 + $0x18] sm:$0xff]  ;;  %v483_v19 = vld [vmem:[%s1106_s3 + $0x10] sm:$0xff]  ;;  %v486_v33 = vld [vmem:[%s1106_s3 + $0x28] sm:$0xff]  ;;  %v453_v61 = vmul.f32 %v437_v35, %v921_v62  ;;  %v501_v43 = vmul.f32 0.18, %v437_v35  ;;  %v461_v44 = vmul.f32 %v445_v36, %v416_v10  ;;  %v292_v52 = vadd.f32 %v185_v57, %v768_v12 }
 0x109   :  { %v492_v8 = vld [vmem:[%s1106_s3 + $0x58] sm:$0xff]  ;;  %v491_v20 = vld [vmem:[%s1106_s3 + $0x50] sm:$0xff]  ;;  %v516_v59 = vadd.f32 %v500_v14, %v484_v21  ;;  %v515_v24 = vadd.f32 %v499_v7, %v483_v19  ;;  %v494_v34 = vld [vmem:[%s1106_s3 + $0x68] sm:$0xff]  ;;  %v509_v45 = vmul.f32 0.18, %v445_v36  ;;  %470 = vst [vmem:[%s1107_s4 + $0x28] sm:$0xff] %v454_v37  ;;  %v518_v46 = vadd.f32 %v502_v38, %v486_v33 }
 0x10a   :  { %v524_v23 = vadd.f32 %v508_v18, %v492_v8  ;;  %v523_v15 = vadd.f32 %v507_v28, %v491_v20  ;;  %478 = vst [vmem:[%s1107_s4 + $0x68] sm:$0xff] %v462_v39  ;;  %v526_v47 = vadd.f32 %v510_v40, %v494_v34  ;;  %469 = vst [vmem:[%s1107_s4 + $0x20] sm:$0xff] %v453_v61 }
 0x10b   :  { %532 = vst [vmem:[%s1108_s5 + $0x18] sm:$0xff] %v516_v59  ;;  %477 = vst [vmem:[%s1107_s4 + $0x60] sm:$0xff] %v461_v44  ;;  %v300_v53 = vadd.f32 %v225_v30, %v837_v31  ;;  %v440_v13 = vmul.f32 %v923_v63, %v293_v48  ;;  %v448_v32 = vmul.f32 %v431_v50, %v301_v49 }
 0x10c   :  { %540 = vst [vmem:[%s1108_s5 + $0x58] sm:$0xff] %v524_v23  ;;  %v439_v5 = vmul.f32 %v925_v3, %v292_v52 }
 0x10d   :  { %v447_v22 = vmul.f32 %v426_v54, %v300_v53  ;;  %v456_v55 = vmul.f32 %v440_v13, %v923_v63  ;;  %v504_v56 = vmul.f32 0.18, %v440_v13  ;;  %v464_v2 = vmul.f32 %v448_v32, %v431_v50 }
 0x10e   :  { %v512_v58 = vmul.f32 0.18, %v448_v32  ;;  %v455_v27 = vmul.f32 %v439_v5, %v925_v3  ;;  %v503_v60 = vmul.f32 0.18, %v439_v5 }
 0x10f   :  { %v463_v4 = vmul.f32 %v447_v22, %v426_v54  ;;  %v511_v6 = vmul.f32 0.18, %v447_v22  ;;  %472 = vst [vmem:[%s1107_s4 + $0x38] sm:$0xff] %v456_v55  ;;  %480 = vst [vmem:[%s1107_s4 + $0x78] sm:$0xff] %v464_v2 }
 0x110   :  { %471 = vst [vmem:[%s1107_s4 + $0x30] sm:$0xff] %v455_v27 }
 0x111   :  { %479 = vst [vmem:[%s1107_s4 + $0x70] sm:$0xff] %v463_v4 }
 0x113   :  { %v485_v41 = vld [vmem:[%s1106_s3 + $0x20] sm:$0xff] }
 0x114   :  { %v493_v42 = vld [vmem:[%s1106_s3 + $0x60] sm:$0xff]  ;;  %v517_v62 = vadd.f32 %v501_v43, %v485_v41 }
 0x115   :  { %531 = vst [vmem:[%s1108_s5 + $0x10] sm:$0xff] %v515_v24  ;;  %539 = vst [vmem:[%s1108_s5 + $0x50] sm:$0xff] %v523_v15  ;;  %v525_v51 = vadd.f32 %v509_v45, %v493_v42 }
 0x116   :  { %534 = vst [vmem:[%s1108_s5 + $0x28] sm:$0xff] %v518_v46  ;;  %542 = vst [vmem:[%s1108_s5 + $0x68] sm:$0xff] %v526_v47 }
 0x117   :  { %533 = vst [vmem:[%s1108_s5 + $0x20] sm:$0xff] %v517_v62  ;;  %541 = vst [vmem:[%s1108_s5 + $0x60] sm:$0xff] %v525_v51 }
 0x11e   :  { %v488_v12 = vld [vmem:[%s1106_s3 + $0x38] sm:$0xff]  ;;  %v487_v21 = vld [vmem:[%s1106_s3 + $0x30] sm:$0xff] }
 0x11f   :  { %v496_v31 = vld [vmem:[%s1106_s3 + $0x78] sm:$0xff]  ;;  %v495_v8 = vld [vmem:[%s1106_s3 + $0x70] sm:$0xff]  ;;  %v520_v63 = vadd.f32 %v504_v56, %v488_v12  ;;  %v519_v10 = vadd.f32 %v503_v60, %v487_v21 }
 0x120   :  { %v528_v9 = vadd.f32 %v512_v58, %v496_v31  ;;  %v527_v3 = vadd.f32 %v511_v6, %v495_v8 }
 0x121   :  { %536 = vst [vmem:[%s1108_s5 + $0x38] sm:$0xff] %v520_v63  ;;  %535 = vst [vmem:[%s1108_s5 + $0x30] sm:$0xff] %v519_v10 }
 0x122   :  { %544 = vst [vmem:[%s1108_s5 + $0x78] sm:$0xff] %v528_v9  ;;  %543 = vst [vmem:[%s1108_s5 + $0x70] sm:$0xff] %v527_v3 }

// kernel: ssg_conv.11
= control target key start
LH: loop header
LB: loop body
LE: loop exit
PB: predicated region body
PF: predicated region fallthrough
CT: control target
= control target key end

     0   :  { %v732_v5 = vmov 0   ;;  %s1113_s0 = inlined_call_operand.vmem [shape: f32[128,128], index: 0, kind: input, shape index: {}]   ;;  %s1114_s1 = inlined_call_operand.vmem [shape: f32[128,128], index: 1, kind: input, shape index: {}]   ;;  %s1115_s2 = inlined_call_operand.vmem [shape: f32[128,1], index: 2, kind: input, shape index: {}]   ;;  %s1116_s3 = inlined_call_operand.vmem [shape: f32[128,128], index: 3, kind: input, shape index: {}, may-alias: {3,5}]   ;;  %s1117_s4 = inlined_call_operand.hbm [shape: f32[128,128], index: 4, kind: output, shape index: {0}]   ;;  %s1118_s5 = inlined_call_operand.vmem [shape: f32[128,128], index: 5, kind: output, shape index: {1}, may-alias: {3,5}]  }
   0x1   :  { %v769_v0 = vld [vmem:[%s1114_s1] sm:$0xff]  ;;  %v774_v1 = vld [vmem:[%s1114_s1 + $0x8] sm:$0xff]  ;;  %v779_v2 = vld [vmem:[%s1114_s1 + $0x10] sm:$0xff]  ;;  %707 = vset.pattern.permute.xlu1 %v732_v5  ;;  %706 = vset.pattern.permute.xlu0 %v732_v5 }
   0x2   :  { %v654_v3 = vpack.c.bf16 %v774_v1, %v769_v0  ;;  %v786_v4 = vld [vmem:[%s1114_s1 + $0x18] sm:$0xff]  ;;  %v793_v7 = vld [vmem:[%s1114_s1 + $0x20] sm:$0xff]  ;;  %v798_v8 = vld [vmem:[%s1114_s1 + $0x28] sm:$0xff] }
   0x3   :  { %v658_v6 = vpack.c.bf16 %v786_v4, %v779_v2  ;;  %v662_v9 = vpack.c.bf16 %v798_v8, %v793_v7  ;;  %v40_v10 = vld [vmem:[%s1113_s0] sm:$0xff]  ;;  %v811_v12 = vld [vmem:[%s1114_s1 + $0x30] sm:$0xff]  ;;  %v816_v13 = vld [vmem:[%s1114_s1 + $0x38] sm:$0xff] }
   0x4   :  { %655 = vmatprep.subr.bf16.mxu0 %v654_v3  ;;  %686 = vmatprep.subr.bf16.mxu1 %v654_v3  ;;  %v48_v11 = vld [vmem:[%s1113_s0 + $0x40] sm:$0xff]  ;;  %v666_v14 = vpack.c.bf16 %v816_v13, %v811_v12  ;;  %v828_v16 = vld [vmem:[%s1114_s1 + $0x48] sm:$0xff]  ;;  %v324_v17 = vld [vmem:[%s1115_s2 + $0x10] sm:$0xff] }
   0x5   :  { %657 = vmatpush3.bf16.msra.mxu0 %v654_v3  ;;  %694 = vmatpush3.bf16.msra.mxu1 %v654_v3  ;;  %v823_v15 = vld [vmem:[%s1114_s1 + $0x40] sm:$0xff]  ;;  %v325_v19 = vld [vmem:[%s1115_s2 + $0x18] sm:$0xff]  ;;  %v844_v21 = vld [vmem:[%s1114_s1 + $0x50] sm:$0xff] }
   0x6   :  { %659 = vmatprep.subr.bf16.mxu0 %v658_v6  ;;  %687 = vmatprep.subr.bf16.mxu1 %v658_v6  ;;  %v322_v18 = vld [vmem:[%s1115_s2] sm:$0xff]  ;;  %v670_v20 = vpack.c.bf16 %v828_v16, %v823_v15  ;;  %v849_v22 = vld [vmem:[%s1114_s1 + $0x58] sm:$0xff]  ;;  %v323_v23 = vld [vmem:[%s1115_s2 + $0x8] sm:$0xff] }
   0x7   :  { %630 = vmatprep.mubr.f32.mxu0 %v40_v10  ;;  %642 = vmatprep.mubr.f32.mxu1 %v48_v11  ;;  %v327_v24 = vld [vmem:[%s1115_s2 + $0x28] sm:$0xff] }
   0x8   :  { %366 = vperm.xlu1 %707, %v324_v17   ;;  %356 = vperm.xlu0 %706, %v322_v18  }
   0x9   :  { %661 = vmatpush3.bf16.msra.mxu0 %v658_v6  ;;  %695 = vmatpush3.bf16.msra.mxu1 %v658_v6 }
   0xa   :  { %663 = vmatprep.subr.bf16.mxu0 %v662_v9  ;;  %688 = vmatprep.subr.bf16.mxu1 %v662_v9 }
   0xc   :  { %371 = vperm.xlu1 %707, %v325_v19  }
   0xd   :  { %665 = vmatpush3.bf16.msra.mxu0 %v662_v9  ;;  %696 = vmatpush3.bf16.msra.mxu1 %v662_v9 }
   0xe   :  { %667 = vmatprep.subr.bf16.mxu0 %v666_v14  ;;  %689 = vmatprep.subr.bf16.mxu1 %v666_v14 }
  0x11   :  { %669 = vmatpush3.bf16.msra.mxu0 %v666_v14  ;;  %697 = vmatpush3.bf16.msra.mxu1 %v666_v14 }
  0x12   :  { %11 = vsyncpa [#allocation4], 0  ;;  %671 = vmatprep.subr.bf16.mxu0 %v670_v20  ;;  %690 = vmatprep.subr.bf16.mxu1 %v670_v20  ;;  %v674_v25 = vpack.c.bf16 %v849_v22, %v844_v21  ;;  %v862_v26 = vld [vmem:[%s1114_s1 + $0x60] sm:$0xff]  ;;  %v867_v27 = vld [vmem:[%s1114_s1 + $0x68] sm:$0xff] }
  0x13   :  { %361 = vperm.xlu0 %706, %v323_v23   ;;  %381 = vperm.xlu1 %707, %v327_v24   ;;  %v326_v28 = vld [vmem:[%s1115_s2 + $0x20] sm:$0xff]  ;;  %v329_v29 = vld [vmem:[%s1115_s2 + $0x38] sm:$0xff]  ;;  %v678_v30 = vpack.c.bf16 %v867_v27, %v862_v26  ;;  %v880_v31 = vld [vmem:[%s1114_s1 + $0x70] sm:$0xff] }
  0x14   :  { %v885_v32 = vld [vmem:[%s1114_s1 + $0x78] sm:$0xff]  ;;  %v328_v33 = vld [vmem:[%s1115_s2 + $0x30] sm:$0xff]  ;;  %v331_v34 = vld [vmem:[%s1115_s2 + $0x48] sm:$0xff]  ;;  %s733_s1 = smov [#allocation3]  }
  0x15   :  { %673 = vmatpush3.bf16.msra.mxu0 %v670_v20  ;;  %698 = vmatpush3.bf16.msra.mxu1 %v670_v20  ;;  %v682_v35 = vpack.c.bf16 %v885_v32, %v880_v31  ;;  %v330_v36 = vld [vmem:[%s1115_s2 + $0x40] sm:$0xff]  ;;  %v333_v37 = vld [vmem:[%s1115_s2 + $0x58] sm:$0xff]  ;;  %v332_v38 = vld [vmem:[%s1115_s2 + $0x50] sm:$0xff]  ;;  %s551_s22 = sshll.u32 %s733_s1, 4  ;;  %s1081_s22 = int_to_ptr.vmem [resolvable:$true] %s551_s22 }
  0x16   :  { %675 = vmatprep.subr.bf16.mxu0 %v674_v25  ;;  %691 = vmatprep.subr.bf16.mxu1 %v674_v25  ;;  %v41_v39 = vld [vmem:[%s1113_s0 + $0x8] sm:$0xff]  ;;  %v42_v41 = vld [vmem:[%s1113_s0 + $0x10] sm:$0xff]  ;;  %v334_v44 = vld [vmem:[%s1115_s2 + $0x60] sm:$0xff]  ;;  %s708_s15 = scalar_lea.vmem %s1081_s22, 2048  ;;  %p713_p1 = scmp.lt.s32.totalorder %s1081_s22, %s1081_s22 }
  0x17   :  { %376 = vperm.xlu0 %706, %v326_v28   ;;  %391 = vperm.xlu1 %707, %v329_v29   ;;  %v49_v40 = vld [vmem:[%s1113_s0 + $0x48] sm:$0xff]  ;;  %v50_v42 = vld [vmem:[%s1113_s0 + $0x50] sm:$0xff]  ;;  %v43_v45 = vld [vmem:[%s1113_s0 + $0x18] sm:$0xff]  ;;  %p709_p0 = scmp.ne.s32.totalorder %s1081_s22, %s708_s15  ;;  %p714_p2 = scmp.lt.s32.totalorder %s708_s15, %s708_s15 }
  0x18   :  { %v335_v43 = vld [vmem:[%s1115_s2 + $0x68] sm:$0xff]  ;;  %v51_v46 = vld [vmem:[%s1113_s0 + $0x58] sm:$0xff]  ;;  %v44_v47 = vld [vmem:[%s1113_s0 + $0x20] sm:$0xff] }
  0x19   :  { %677 = vmatpush3.bf16.msra.mxu0 %v674_v25  ;;  %699 = vmatpush3.bf16.msra.mxu1 %v674_v25  ;;  %v52_v48 = vld [vmem:[%s1113_s0 + $0x60] sm:$0xff]  ;;  %v337_v49 = vld [vmem:[%s1115_s2 + $0x78] sm:$0xff]  ;;  %v336_v50 = vld [vmem:[%s1115_s2 + $0x70] sm:$0xff]  ;;  %p715_p3 = por %p714_p2, %p713_p1 }
  0x1a   :  { %679 = vmatprep.subr.bf16.mxu0 %v678_v30  ;;  %692 = vmatprep.subr.bf16.mxu1 %v678_v30  ;;  %v45_v51 = vld [vmem:[%s1113_s0 + $0x28] sm:$0xff]  ;;  %v46_v53 = vld [vmem:[%s1113_s0 + $0x30] sm:$0xff]  ;;  %v47_v55 = vld [vmem:[%s1113_s0 + $0x38] sm:$0xff] }
  0x1b   :  { %386 = vperm.xlu0 %706, %v328_v33   ;;  %401 = vperm.xlu1 %707, %v331_v34   ;;  %v53_v52 = vld [vmem:[%s1113_s0 + $0x68] sm:$0xff]  ;;  %v54_v54 = vld [vmem:[%s1113_s0 + $0x70] sm:$0xff]  ;;  %v55_v56 = vld [vmem:[%s1113_s0 + $0x78] sm:$0xff]  ;;  %p716_p4 = pnand %p715_p3, %p709_p0 }
  0x1c   :  { %v483_v28 = vld [vmem:[%s1116_s3 + $0x8] sm:$0xff] }
  0x1d   :  { %681 = vmatpush3.bf16.msra.mxu0 %v678_v30  ;;  %700 = vmatpush3.bf16.msra.mxu1 %v678_v30 }
  0x1e   :  { %683 = vmatprep.subr.bf16.mxu0 %v682_v35  ;;  %693 = vmatprep.subr.bf16.mxu1 %v682_v35 }
  0x1f   :  { %396 = vperm.xlu0 %706, %v330_v36   ;;  %411 = vperm.xlu1 %707, %v333_v37  }
  0x21   :  { %685 = vmatpush3.bf16.msra.mxu0 %v682_v35  ;;  %701 = vmatpush3.bf16.msra.mxu1 %v682_v35 }
  0x23   :  { %406 = vperm.xlu0 %706, %v332_v38   ;;  %421 = vperm.xlu1 %707, %v335_v43  }
  0x24   :  { %631 = vmatmul.mubr.f32.vlgmr.msra.gmra.mrb[0].mxu0 %v41_v39  ;;  %643 = vmatmul.mubr.f32.vlgmr.msra.gmra.mrb[0].mxu1 %v49_v40 }
  0x25   :  { %633 = vmatprep.mubr.f32.mxu0 %v42_v41  ;;  %645 = vmatprep.mubr.f32.mxu1 %v50_v42 }
  0x27   :  { %416 = vperm.xlu0 %706, %v334_v44   ;;  %431 = vperm.xlu1 %707, %v337_v49  }
  0x28   :  { %634 = vmatmul.mubr.f32.gmra.mrb[2].mxu0 %v43_v45  ;;  %646 = vmatmul.mubr.f32.gmra.mrb[2].mxu1 %v51_v46 }
  0x29   :  { %636 = vmatprep.mubr.f32.mxu0 %v44_v47  ;;  %648 = vmatprep.mubr.f32.mxu1 %v52_v48 }
  0x2b   :  { %426 = vperm.xlu0 %706, %v336_v50  }
  0x2c   :  { %637 = vmatmul.mubr.f32.gmra.mrb[4].mxu0 %v45_v51  ;;  %649 = vmatmul.mubr.f32.gmra.mrb[4].mxu1 %v53_v52 }
  0x2d   :  { %639 = vmatprep.mubr.f32.mxu0 %v46_v53  ;;  %651 = vmatprep.mubr.f32.mxu1 %v54_v54 }
  0x30   :  { %640 = vmatmul.mubr.f32.gmra.mrb[6].mxu0 %v47_v55  ;;  %652 = vmatmul.mubr.f32.gmra.mrb[6].mxu1 %v55_v56 }
  0x87   :  { %v958_v57 = vpop.permute.xlu1 %366  ;;  %v357_v58 = vpop.permute.xlu0 %356 }
  0x8b   :  { %v960_v59 = vpop.permute.xlu1 %371 }
  0x92   :  { %v362_v60 = vpop.permute.xlu0 %361  ;;  %v962_v61 = vpop.permute.xlu1 %381 }
  0x96   :  { %v964_v62 = vpop.permute.xlu0 %376  ;;  %v966_v63 = vpop.permute.xlu1 %391 }
  0x9a   :  { %v968_v3 = vpop.permute.xlu0 %386  ;;  %v402_v5 = vpop.permute.xlu1 %401 }
  0x9e   :  { %v397_v6 = vpop.permute.xlu0 %396  ;;  %v412_v23 = vpop.permute.xlu1 %411 }
  0xa2   :  { %v407_v24 = vpop.permute.xlu0 %406 }
  0xf7   :  { %v632_v9 = vpop.f32.mrb[0].mxu0  ;;  %v644_v10 = vpop.f32.mrb[0].mxu1 }
  0xf8   :  { %v288_v11 = vadd.f32 %v632_v9, %v774_v1  ;;  %v296_v14 = vadd.f32 %v644_v10, %v828_v16  ;;  %v156_v17 = vpop.f32.mrb[1].mxu0  ;;  %v196_v18 = vpop.f32.mrb[1].mxu1  ;;  %v491_v1 = vld [vmem:[%s1116_s3 + $0x48] sm:$0xff]  ;;  %v482_v16 = vld [vmem:[%s1116_s3] sm:$0xff] }
  0xf9   :  { %v287_v19 = vadd.f32 %v156_v17, %v769_v0  ;;  %v295_v20 = vadd.f32 %v196_v18, %v823_v15  ;;  %v490_v15 = vld [vmem:[%s1116_s3 + $0x40] sm:$0xff]  ;;  %v422_v9 = vpop.permute.xlu1 %421  ;;  %v417_v10 = vpop.permute.xlu0 %416 }
  0xfa   :  { %v435_v25 = vmul.f32 %v362_v60, %v288_v11  ;;  %v443_v29 = vmul.f32 %v402_v5, %v296_v14 }
  0xfb   :  { %v434_v30 = vmul.f32 %v357_v58, %v287_v19  ;;  %v442_v0 = vmul.f32 %v397_v6, %v295_v20  ;;  %v635_v33 = vpop.f32.mrb[2].mxu0  ;;  %v647_v34 = vpop.f32.mrb[2].mxu1 }
  0xfc   :  { %v451_v35 = vmul.f32 %v435_v25, %v362_v60  ;;  %v499_v36 = vmul.f32 0.18, %v435_v25  ;;  %v459_v37 = vmul.f32 %v443_v29, %v402_v5  ;;  %v507_v38 = vmul.f32 0.18, %v443_v29  ;;  %v166_v39 = vpop.f32.mrb[3].mxu0  ;;  %v206_v40 = vpop.f32.mrb[3].mxu1 }
  0xfd   :  { %v450_v41 = vmul.f32 %v434_v30, %v357_v58  ;;  %v498_v42 = vmul.f32 0.18, %v434_v30  ;;  %v458_v43 = vmul.f32 %v442_v0, %v397_v6  ;;  %v506_v44 = vmul.f32 0.18, %v442_v0 }
  0xfe   :  { %467 = vst [vmem:[#allocation3 + $0x8] sm:$0xff] %v451_v35  ;;  %v515_v45 = vadd.f32 %v499_v36, %v483_v28  ;;  %475 = vst [vmem:[#allocation3 + $0x48] sm:$0xff] %v459_v37  ;;  %v523_v46 = vadd.f32 %v507_v38, %v491_v1  ;;  %v290_v47 = vadd.f32 %v635_v33, %v786_v4 }
  0xff   :  { %v298_v48 = vadd.f32 %v647_v34, %v849_v22  ;;  %466 = vst [vmem:[#allocation3] sm:$0xff] %v450_v41  ;;  %v514_v49 = vadd.f32 %v498_v42, %v482_v16  ;;  %474 = vst [vmem:[#allocation3 + $0x40] sm:$0xff] %v458_v43  ;;  %v522_v50 = vadd.f32 %v506_v44, %v490_v15  ;;  %v638_v53 = vpop.f32.mrb[4].mxu0  ;;  %v650_v54 = vpop.f32.mrb[4].mxu1 }
 0x100   :  { %v289_v51 = vadd.f32 %v166_v39, %v779_v2  ;;  %v297_v52 = vadd.f32 %v206_v40, %v844_v21  ;;  %531 = vst [vmem:[%s1118_s5 + $0x8] sm:$0xff] %v515_v45  ;;  %539 = vst [vmem:[%s1118_s5 + $0x48] sm:$0xff] %v523_v46  ;;  %v437_v4 = vmul.f32 %v960_v59, %v290_v47  ;;  %v176_v2 = vpop.f32.mrb[5].mxu0  ;;  %v216_v58 = vpop.f32.mrb[5].mxu1 }
 0x101   :  { %v445_v22 = vmul.f32 %v412_v23, %v298_v48  ;;  %v292_v55 = vadd.f32 %v638_v53, %v798_v8  ;;  %v300_v56 = vadd.f32 %v650_v54, %v867_v27  ;;  %530 = vst [vmem:[%s1118_s5] sm:$0xff] %v514_v49  ;;  %538 = vst [vmem:[%s1118_s5 + $0x40] sm:$0xff] %v522_v50  ;;  %v432_v50 = vpop.permute.xlu1 %431  ;;  %v427_v54 = vpop.permute.xlu0 %426 }
 0x102   :  { %v436_v27 = vmul.f32 %v958_v57, %v289_v51  ;;  %v444_v60 = vmul.f32 %v407_v24, %v297_v52  ;;  %v291_v5 = vadd.f32 %v176_v2, %v793_v7  ;;  %v299_v6 = vadd.f32 %v216_v58, %v862_v26 }
 0x103   :  { %v453_v11 = vmul.f32 %v437_v4, %v960_v59  ;;  %v501_v14 = vmul.f32 0.18, %v437_v4  ;;  %v461_v17 = vmul.f32 %v445_v22, %v412_v23  ;;  %v509_v18 = vmul.f32 0.18, %v445_v22  ;;  %v641_v29 = vpop.f32.mrb[6].mxu0  ;;  %v653_v1 = vpop.f32.mrb[6].mxu1 }
 0x104   :  { %v452_v25 = vmul.f32 %v436_v27, %v958_v57  ;;  %v500_v7 = vmul.f32 0.18, %v436_v27  ;;  %v460_v28 = vmul.f32 %v444_v60, %v407_v24  ;;  %v508_v26 = vmul.f32 0.18, %v444_v60  ;;  %v186_v0 = vpop.f32.mrb[7].mxu0  ;;  %v226_v15 = vpop.f32.mrb[7].mxu1 }
 0x105   :  { %469 = vst [vmem:[#allocation3 + $0x18] sm:$0xff] %v453_v11  ;;  %477 = vst [vmem:[#allocation3 + $0x58] sm:$0xff] %v461_v17  ;;  %v439_v30 = vmul.f32 %v962_v61, %v292_v55  ;;  %v447_v16 = vmul.f32 %v422_v9, %v300_v56  ;;  %v438_v35 = vmul.f32 %v964_v62, %v291_v5 }
 0x106   :  { %468 = vst [vmem:[#allocation3 + $0x10] sm:$0xff] %v452_v25  ;;  %476 = vst [vmem:[#allocation3 + $0x50] sm:$0xff] %v460_v28  ;;  %v446_v37 = vmul.f32 %v417_v10, %v299_v6  ;;  %v294_v48 = vadd.f32 %v641_v29, %v816_v13  ;;  %v302_v49 = vadd.f32 %v653_v1, %v885_v32 }
 0x107   :  { %v455_v38 = vmul.f32 %v439_v30, %v962_v61  ;;  %v503_v39 = vmul.f32 0.18, %v439_v30  ;;  %v463_v40 = vmul.f32 %v447_v16, %v422_v9  ;;  %v511_v41 = vmul.f32 0.18, %v447_v16 }
 0x108   :  { %v485_v21 = vld [vmem:[%s1116_s3 + $0x18] sm:$0xff]  ;;  %v484_v19 = vld [vmem:[%s1116_s3 + $0x10] sm:$0xff]  ;;  %v487_v57 = vld [vmem:[%s1116_s3 + $0x28] sm:$0xff]  ;;  %v454_v43 = vmul.f32 %v438_v35, %v964_v62  ;;  %v502_v44 = vmul.f32 0.18, %v438_v35  ;;  %v462_v45 = vmul.f32 %v446_v37, %v417_v10  ;;  %v293_v53 = vadd.f32 %v186_v0, %v811_v12 }
 0x109   :  { %v493_v8 = vld [vmem:[%s1116_s3 + $0x58] sm:$0xff]  ;;  %v492_v20 = vld [vmem:[%s1116_s3 + $0x50] sm:$0xff]  ;;  %v517_v59 = vadd.f32 %v501_v14, %v485_v21  ;;  %v516_v33 = vadd.f32 %v500_v7, %v484_v19  ;;  %v495_v24 = vld [vmem:[%s1116_s3 + $0x68] sm:$0xff]  ;;  %v510_v61 = vmul.f32 0.18, %v446_v37  ;;  %471 = vst [vmem:[#allocation3 + $0x28] sm:$0xff] %v455_v38  ;;  %v519_v46 = vadd.f32 %v503_v39, %v487_v57 }
 0x10a   :  { %v525_v23 = vadd.f32 %v509_v18, %v493_v8  ;;  %v524_v34 = vadd.f32 %v508_v26, %v492_v20  ;;  %v486_v36 = vld [vmem:[%s1116_s3 + $0x20] sm:$0xff]  ;;  %479 = vst [vmem:[#allocation3 + $0x68] sm:$0xff] %v463_v40  ;;  %v527_v47 = vadd.f32 %v511_v41, %v495_v24  ;;  %470 = vst [vmem:[#allocation3 + $0x20] sm:$0xff] %v454_v43 }
 0x10b   :  { %533 = vst [vmem:[%s1118_s5 + $0x18] sm:$0xff] %v517_v59  ;;  %v518_v51 = vadd.f32 %v502_v44, %v486_v36  ;;  %478 = vst [vmem:[#allocation3 + $0x60] sm:$0xff] %v462_v45  ;;  %v301_v62 = vadd.f32 %v226_v15, %v880_v31  ;;  %v441_v13 = vmul.f32 %v966_v63, %v294_v48 }
 0x10c   :  { %541 = vst [vmem:[%s1118_s5 + $0x58] sm:$0xff] %v525_v23  ;;  %v449_v32 = vmul.f32 %v432_v50, %v302_v49  ;;  %v440_v4 = vmul.f32 %v968_v3, %v293_v53 }
 0x10d   :  { %v448_v22 = vmul.f32 %v427_v54, %v301_v62  ;;  %v457_v55 = vmul.f32 %v441_v13, %v966_v63  ;;  %v505_v56 = vmul.f32 0.18, %v441_v13 }
 0x10e   :  { %v465_v2 = vmul.f32 %v449_v32, %v432_v50  ;;  %v513_v58 = vmul.f32 0.18, %v449_v32  ;;  %v456_v27 = vmul.f32 %v440_v4, %v968_v3  ;;  %v504_v60 = vmul.f32 0.18, %v440_v4 }
 0x10f   :  { %v464_v63 = vmul.f32 %v448_v22, %v427_v54  ;;  %v512_v5 = vmul.f32 0.18, %v448_v22  ;;  %473 = vst [vmem:[#allocation3 + $0x38] sm:$0xff] %v457_v55 }
 0x110   :  { %481 = vst [vmem:[#allocation3 + $0x78] sm:$0xff] %v465_v2  ;;  %472 = vst [vmem:[#allocation3 + $0x30] sm:$0xff] %v456_v27 }
 0x111   :  { %480 = vst [vmem:[#allocation3 + $0x70] sm:$0xff] %v464_v63 }
 0x113   :  { %v494_v42 = vld [vmem:[%s1116_s3 + $0x60] sm:$0xff] }
 0x114   :  { %532 = vst [vmem:[%s1118_s5 + $0x10] sm:$0xff] %v516_v33  ;;  %540 = vst [vmem:[%s1118_s5 + $0x50] sm:$0xff] %v524_v34  ;;  %v526_v52 = vadd.f32 %v510_v61, %v494_v42 }
 0x115   :  { %535 = vst [vmem:[%s1118_s5 + $0x28] sm:$0xff] %v519_v46  ;;  %543 = vst [vmem:[%s1118_s5 + $0x68] sm:$0xff] %v527_v47 }
 0x116   :  { %534 = vst [vmem:[%s1118_s5 + $0x20] sm:$0xff] %v518_v51  ;;  %542 = vst [vmem:[%s1118_s5 + $0x60] sm:$0xff] %v526_v52 }
 0x11d   :  { %v489_v12 = vld [vmem:[%s1116_s3 + $0x38] sm:$0xff]  ;;  %v488_v21 = vld [vmem:[%s1116_s3 + $0x30] sm:$0xff] }
 0x11e   :  { %v497_v31 = vld [vmem:[%s1116_s3 + $0x78] sm:$0xff]  ;;  %v496_v8 = vld [vmem:[%s1116_s3 + $0x70] sm:$0xff]  ;;  %v521_v6 = vadd.f32 %v505_v56, %v489_v12  ;;  %v520_v10 = vadd.f32 %v504_v60, %v488_v21 }
 0x11f   :  { %v529_v9 = vadd.f32 %v513_v58, %v497_v31  ;;  %v528_v11 = vadd.f32 %v512_v5, %v496_v8 }
 0x120   :  { %537 = vst [vmem:[%s1118_s5 + $0x38] sm:$0xff] %v521_v6 }
 0x121   :  { %545 = vst [vmem:[%s1118_s5 + $0x78] sm:$0xff] %v529_v9 }
 0x122   :  { %719 = shalt.err (!%p716_p4)
}
 0x123   :  { %s720_s18 = scalar_lea.hbm %s1117_s4, 2048 }
 0x124   :  { %p721_p5 = scmp.ne.s32.totalorder %s1117_s4, %s720_s18  ;;  %p724_p6 = scmp.lt.u32.totalorder %s720_s18, %s1117_s4 }
 0x126   :  { %p726_p7 = pnand %p724_p6, %p721_p5 }
 0x128   :  { %729 = shalt.err (!%p726_p7)
}
 0x129   :  { %s734_s23 = smov 128   ;;  %s735_s24 = smov 8   ;;  %536 = vst [vmem:[%s1118_s5 + $0x30] sm:$0xff] %v520_v10  ;;  %544 = vst [vmem:[%s1118_s5 + $0x70] sm:$0xff] %v528_v11 }
 0x12a   :  { %557 = dma.vmem_to_hbm [thread:$0]  %s1081_s22, 2048, %s1117_s4, [#allocation4], %s734_s23, %s734_s23, %s735_s24  }
 0x12b   :  { %730 = dma.done.wait [#allocation4], 2048  }
 0x12c   :  { %731 = vsyncadd [#allocation4], 4294965248 }
 0x12d   :  { %565 = vsyncpa [#allocation4], 1 }

</bundles_post_ra>
